<compile_context>
chip_gen: v7x
topology: tpu7x:2x2x1
jax: 0.10.0
libtpu: 0.0.40
codegen_flags: <defaults>
</compile_context>

<pallas_src>
import math
import functools

import jax
import jax.numpy as jnp
from jax import lax
from jax.experimental import pallas as pl
from jax.experimental.pallas import tpu as pltpu


def _cross_attn_kernel(dec_ref, enc_ref, wq_ref, wkv_ref, wo_ref, out_ref,
                       ctx_ref, *, batch_block, num_heads, head_dim,
                       dec_len, enc_len, embed_dim, compute_dtype):
    """One grid step = `batch_block` batch elements.

    dec_ref: (Bt*Sd, E)   enc_ref: (Bt*Se, E)
    wq_ref:  (E, E) with 1/sqrt(d) pre-folded   wkv_ref: (E, 2E) = [Wk | Wv]
    wo_ref:  (E, E)       out_ref: (Bt*Sd, E)
    ctx_ref: (Sd, E) f32 VMEM scratch; per-head context stored lane-slice-wise,
             consumed by ONE (Sd,E)@(E,E) output-projection matmul.
    """
    E, H, d = embed_dim, num_heads, head_dim
    Sd, Se = dec_len, enc_len
    cd = compute_dtype

    # Loop-invariant weight loads / casts (bf16 on v6e/v7x doubles MXU rate).
    wq = wq_ref[...].astype(cd)
    wkv = wkv_ref[...].astype(cd)
    wo = wo_ref[...].astype(cd)

    # (Sd, d) x (Se, d) contracting on the last dims -> (Sd, Se); MXU-native
    # transposed-RHS matmul, no explicit kh transpose materialized.
    dimnums = (((1,), (1,)), ((), ()))

    def body(b, carry):
        db = pl.multiple_of(b * Sd, Sd)     # decoder row offset of batch elem b
        eb = pl.multiple_of(b * Se, Se)     # encoder row offset of batch elem b

        dec_b = dec_ref[pl.ds(db, Sd), :].astype(cd)          # (Sd, E)
        enc_b = enc_ref[pl.ds(eb, Se), :].astype(cd)          # (Se, E)

        # Fused projections (Q pre-scaled by 1/sqrt(d) via the weight prep).
        q = jnp.dot(dec_b, wq, preferred_element_type=jnp.float32)    # (Sd, E)
        kv = jnp.dot(enc_b, wkv, preferred_element_type=jnp.float32)  # (Se, 2E)

        # TODO(synk): for head_dim < 128 these per-head slices are lane-offset
        # extractions; a sublane-major head layout (heads stacked on rows)
        # would remove the lane shuffles.  Irrelevant once E >= 128.
        for h in range(H):                  # static unroll, H is small
            lo = h * d
            qh = q[:, lo:lo + d].astype(cd)                   # (Sd, d)
            kh = kv[:, lo:lo + d].astype(cd)                  # (Se, d)
            vh = kv[:, E + lo:E + lo + d].astype(cd)          # (Se, d)

            s = lax.dot_general(qh, kh, dimnums,
                                preferred_element_type=jnp.float32)   # (Sd, Se)
            s = s - jnp.max(s, axis=-1, keepdims=True)
            p = jnp.exp(s)                                    # unnormalized
            l = jnp.sum(p, axis=-1, keepdims=True)            # (Sd, 1)
            h_out = jnp.dot(p.astype(cd), vh,
                            preferred_element_type=jnp.float32)       # (Sd, d)
            # Deferred softmax normalization: scale the (Sd, d) head output by
            # the exact row-sum reciprocal instead of the (Sd, Se) p matrix.
            # dropout_rate = 0 -> identity.
            ctx_ref[:, lo:lo + d] = h_out / l                 # lane-slice store

        # Single output projection: full K = E contraction on the MXU.
        out_b = jnp.dot(ctx_ref[...].astype(cd), wo,
                        preferred_element_type=jnp.float32)
        out_ref[pl.ds(db, Sd), :] = out_b.astype(out_ref.dtype)
        return carry

    lax.fori_loop(0, batch_block, body, 0)


def prepare_cross_attention_weights(wq, wk, wv, wo, *, num_heads):
    """One-time weight prep, hoisted out of the forward pass:
    fold 1/sqrt(head_dim) into Wq and fuse [Wk | Wv] into one (E, 2E) matrix.
    Weights are stored (in, out) so y = x @ W  (== nn.Linear with W = W_t.T)."""
    E = wq.shape[0]
    head_dim = E // num_heads
    wq_scaled = wq * (1.0 / math.sqrt(head_dim))
    wkv = jnp.concatenate([wk, wv], axis=1)                    # (E, 2E)
    return wq_scaled, wkv, wo


def _pick_batch_block(batch, dec_len, enc_len, embed_dim, itemsize,
                      vmem_budget_bytes):
    """Largest batch_block that (a) leaves >= 2 grid steps when possible (v7x
    megacore), (b) keeps 8-row-aligned f32 blocks, (c) fits the VMEM budget."""
    E = embed_dim

    def block_bytes(bb):
        io = 2 * (bb * dec_len * E + bb * enc_len * E + bb * dec_len * E) * itemsize
        weights = 2 * (E * E + 2 * E * E + E * E) * itemsize   # worst case 2x buf
        scratch = (dec_len * E + 2 * enc_len * E + dec_len * enc_len) * 4
        return io + weights + scratch

    cands = [bb for bb in range(1, batch + 1)
             if batch % bb == 0 and (bb * dec_len) % 8 == 0
             and (bb * enc_len) % 8 == 0]
    if not cands:
        return batch                        # full-dim blocks are always legal
    fitting = [bb for bb in cands if block_bytes(bb) <= vmem_budget_bytes]
    pool = fitting if fitting else [min(cands)]
    multi = [bb for bb in pool if batch // bb >= 2]   # keep both v7x TCs busy
    return max(multi) if multi else max(pool)


def cross_attention(encoder_output, decoder_input, wq_scaled, wkv, wo, *,
                    num_heads, batch_block=None, mxu_bf16=False,
                    vmem_budget_bytes=24 * 1024 * 1024):
    """Forward pass of the PyTorch CrossAttention module (dropout_rate = 0)."""
    B, Sd, E = decoder_input.shape
    _, Se, _ = encoder_output.shape
    assert E % num_heads == 0
    head_dim = E // num_heads
    assert wkv.shape == (E, 2 * E)

    if batch_block is None:
        batch_block = _pick_batch_block(B, Sd, Se, E,
                                        decoder_input.dtype.itemsize,
                                        vmem_budget_bytes)
    assert B % batch_block == 0
    num_blocks = B // batch_block

    dec_flat = decoder_input.reshape(B * Sd, E)       # free, contiguous reshape
    enc_flat = encoder_output.reshape(B * Se, E)

    compute_dtype = jnp.bfloat16 if mxu_bf16 else jnp.float32
    kernel = functools.partial(
        _cross_attn_kernel,
        batch_block=batch_block, num_heads=num_heads, head_dim=head_dim,
        dec_len=Sd, enc_len=Se, embed_dim=E, compute_dtype=compute_dtype)

    # Explicit VMEM budget: raises v5e's 16 MiB default scoped limit, leaves
    # headroom under v7x's 64 MiB physical VMEM.
    vmem_limit = int(min(48 * 1024 * 1024,
                         max(32 * 1024 * 1024, 2 * vmem_budget_bytes)))

    def build(single_buffer_weights):
        def w_spec(shape):
            kw = {}
            if single_buffer_weights and num_blocks > 1:
                # Constant index_map -> double-buffering the weights is waste.
                kw["pipeline_mode"] = pl.Buffered(1)
            return pl.BlockSpec(shape, lambda i: (0, 0), **kw)

        return pl.pallas_call(
            kernel,
            out_shape=jax.ShapeDtypeStruct((B * Sd, E), decoder_input.dtype),
            grid=(num_blocks,),
            in_specs=[
                pl.BlockSpec((batch_block * Sd, E), lambda i: (i, 0)),  # dec rows
                pl.BlockSpec((batch_block * Se, E), lambda i: (i, 0)),  # enc rows
                w_spec((E, E)),           # Wq (1/sqrt(d) pre-folded)
                w_spec((E, 2 * E)),       # [Wk | Wv]
                w_spec((E, E)),           # Wo
            ],
            out_specs=pl.BlockSpec((batch_block * Sd, E), lambda i: (i, 0)),
            scratch_shapes=[pltpu.VMEM((Sd, E), jnp.float32)],          # ctx
            compiler_params=pltpu.CompilerParams(
                dimension_semantics=("parallel",),
                vmem_limit_bytes=vmem_limit),
        )

    # TODO(synk): for long encoder sequences (esp. v7x's 64 MiB VMEM), add an
    # online-softmax Se-tiled grid axis instead of full-Se K/V blocks.
    # TODO(synk): for E < 128 the output stays lane-sparse (masked vst); a
    # lane-dense repack (fold batch into the last dim wrapper-side) is the
    # bigger lever for such toy shapes.
    try:
        out_flat = build(True)(dec_flat, enc_flat, wq_scaled, wkv, wo)
    except Exception:
        # pl.Buffered(1) unsupported by this JAX build -> default 2x buffering.
        out_flat = build(False)(dec_flat, enc_flat, wq_scaled, wkv, wo)

    return out_flat.reshape(B, Sd, E)


def cross_attention_ref(encoder_output, decoder_input, wq, wk, wv, wo, *,
                        num_heads):
    """Pure-JAX reference mirroring the PyTorch forward (unprepared weights)."""
    B, Sd, E = decoder_input.shape
    _, Se, _ = encoder_output.shape
    d = E // num_heads
    Q = decoder_input @ wq
    K = encoder_output @ wk
    V = encoder_output @ wv
    Q = Q.reshape(B, Sd, num_heads, d).transpose(0, 2, 1, 3)
    K = K.reshape(B, Se, num_heads, d).transpose(0, 2, 1, 3)
    V = V.reshape(B, Se, num_heads, d).transpose(0, 2, 1, 3)
    s = jnp.einsum("bhqd,bhkd->bhqk", Q, K) / math.sqrt(d)
    p = jax.nn.softmax(s, axis=-1)
    ctx = jnp.einsum("bhqk,bhkd->bhqd", p, V)
    ctx = ctx.transpose(0, 2, 1, 3).reshape(B, Sd, E)
    return ctx @ wo


if __name__ == "__main__":
    # Small shapes consistent with the module's forward.
    B = 2
    E = 32          # embedding_dim
    H = 4           # num_heads  (head_dim = 8)
    Sd = 8          # decoder_seq_len
    Se = 16         # encoder_seq_len

    key = jax.random.PRNGKey(0)
    k_enc, k_dec, k_wq, k_wk, k_wv, k_wo = jax.random.split(key, 6)

    encoder_output = jax.random.normal(k_enc, (B, Se, E), dtype=jnp.float32)
    decoder_input = jax.random.normal(k_dec, (B, Sd, E), dtype=jnp.float32)

    # Deterministic parameter init, stored as (in, out) so y = x @ W.
    scale = 1.0 / math.sqrt(E)
    wq = jax.random.normal(k_wq, (E, E), dtype=jnp.float32) * scale
    wk = jax.random.normal(k_wk, (E, E), dtype=jnp.float32) * scale
    wv = jax.random.normal(k_wv, (E, E), dtype=jnp.float32) * scale
    wo = jax.random.normal(k_wo, (E, E), dtype=jnp.float32) * scale

    # One-time weight prep (hoisted out of the per-call forward).
    wq_s, wkv, wo_p = prepare_cross_attention_weights(wq, wk, wv, wo,
                                                      num_heads=H)

    ref = cross_attention_ref(encoder_output, decoder_input, wq, wk, wv, wo,
                              num_heads=H)

    # f32 MXU-operand path (exact softmax divide -> parity with the reference).
    out = cross_attention(encoder_output, decoder_input, wq_s, wkv, wo_p,
                          num_heads=H)
    out = jax.block_until_ready(out)
    assert out.shape == (B, Sd, E)
    assert jnp.allclose(out, ref, atol=1e-2, rtol=1e-2), "f32 path mismatch"

    # bf16 MXU-operand path (v6e/v7x fast path); accumulation/softmax stay f32.
    out_bf16 = cross_attention(encoder_output, decoder_input, wq_s, wkv, wo_p,
                               num_heads=H, mxu_bf16=True)
    out_bf16 = jax.block_until_ready(out_bf16)
    assert jnp.allclose(out_bf16, ref, atol=8e-2, rtol=8e-2), "bf16 path mismatch"

    print("KERNEL_OK")
</pallas_src>

<mosaic_0001>
module attributes {stable_mosaic.version = 11 : i64} {
  func.func @_cross_attn_kernel(%arg0: i32, %arg1: memref<8x32xf32, #tpu.memory_space<vmem>>, %arg2: memref<16x32xf32, #tpu.memory_space<vmem>>, %arg3: memref<32x32xf32, #tpu.memory_space<vmem>>, %arg4: memref<32x64xf32, #tpu.memory_space<vmem>>, %arg5: memref<32x32xf32, #tpu.memory_space<vmem>>, %arg6: memref<8x32xf32, #tpu.memory_space<vmem>>, %arg7: memref<8x32xf32, #tpu.memory_space<vmem>>) attributes {dimension_semantics = [#tpu.dimension_semantics<parallel>], iteration_bounds = array<i64: 2>, scalar_prefetch = 0 : i64, scratch_operands = 1 : i64, tpu.core_type = #tpu.core_type<tc>, window_params = [{transform_indices = @transform_0, window_bounds = array<i64: 8, 32>}, {transform_indices = @transform_1, window_bounds = array<i64: 16, 32>}, {pipeline_mode = #tpu.pipeline_mode<synchronous>, transform_indices = @transform_2, window_bounds = array<i64: 32, 32>}, {pipeline_mode = #tpu.pipeline_mode<synchronous>, transform_indices = @transform_3, window_bounds = array<i64: 32, 64>}, {pipeline_mode = #tpu.pipeline_mode<synchronous>, transform_indices = @transform_4, window_bounds = array<i64: 32, 32>}, {transform_indices = @transform_5, window_bounds = array<i64: 8, 32>}]} {
    %c0 = arith.constant 0 : index
    %c0_0 = arith.constant 0 : index
    %0 = vector.load %arg3[%c0, %c0_0] : memref<32x32xf32, #tpu.memory_space<vmem>>, vector<32x32xf32>
    %c0_1 = arith.constant 0 : index
    %c0_2 = arith.constant 0 : index
    %1 = vector.load %arg4[%c0_1, %c0_2] : memref<32x64xf32, #tpu.memory_space<vmem>>, vector<32x64xf32>
    %c0_3 = arith.constant 0 : index
    %c0_4 = arith.constant 0 : index
    %2 = vector.load %arg5[%c0_3, %c0_4] : memref<32x32xf32, #tpu.memory_space<vmem>>, vector<32x32xf32>
    %c0_i32 = arith.constant 0 : i32
    %c8_i32 = arith.constant 8 : i32
    %3 = arith.muli %c0_i32, %c8_i32 : i32
    %4 = tpu.assume_multiple %3, 8 : i32
    %c16_i32 = arith.constant 16 : i32
    %5 = arith.muli %c0_i32, %c16_i32 : i32
    %6 = tpu.assume_multiple %5, 16 : i32
    %7 = arith.index_cast %4 : i32 to index
    %c0_5 = arith.constant 0 : index
    %8 = vector.load %arg1[%7, %c0_5] : memref<8x32xf32, #tpu.memory_space<vmem>>, vector<8x32xf32>
    %9 = arith.index_cast %6 : i32 to index
    %c0_6 = arith.constant 0 : index
    %10 = vector.load %arg2[%9, %c0_6] : memref<16x32xf32, #tpu.memory_space<vmem>>, vector<16x32xf32>
    %cst = arith.constant dense<0.000000e+00> : vector<8x32xf32>
    %11 = tpu.matmul %8, %0, %cst {dimension_numbers = #tpu.dot_dimension_numbers<[1], [0], [0], [1], [0, 0, 1, 1], [], []>} : vector<8x32xf32>, vector<32x32xf32>, vector<8x32xf32> -> vector<8x32xf32>
    %cst_7 = arith.constant dense<0.000000e+00> : vector<16x64xf32>
    %12 = tpu.matmul %10, %1, %cst_7 {dimension_numbers = #tpu.dot_dimension_numbers<[1], [0], [0], [1], [0, 0, 1, 1], [], []>} : vector<16x32xf32>, vector<32x64xf32>, vector<16x64xf32> -> vector<16x64xf32>
    %13 = vector.extract_strided_slice %11 {offsets = [0, 0], sizes = [8, 8], strides = [1, 1]} : vector<8x32xf32> to vector<8x8xf32>
    %14 = vector.extract_strided_slice %12 {offsets = [0, 0], sizes = [16, 8], strides = [1, 1]} : vector<16x64xf32> to vector<16x8xf32>
    %15 = vector.extract_strided_slice %12 {offsets = [0, 32], sizes = [16, 8], strides = [1, 1]} : vector<16x64xf32> to vector<16x8xf32>
    %cst_8 = arith.constant dense<0.000000e+00> : vector<8x16xf32>
    %16 = tpu.matmul %13, %14, %cst_8 {dimension_numbers = #tpu.dot_dimension_numbers<[1], [1], [0], [0], [0, 0, 1, 0], [], []>} : vector<8x8xf32>, vector<16x8xf32>, vector<8x16xf32> -> vector<8x16xf32>
    %cst_9 = arith.constant dense<0xFF800000> : vector<8xf32>
    %17 = vector.multi_reduction <maximumf>, %16, %cst_9 [1] : vector<8x16xf32> to vector<8xf32>
    %18 = vector.shape_cast %17 : vector<8xf32> to vector<8x1xf32>
    %19 = vector.broadcast %18 : vector<8x1xf32> to vector<8x16xf32>
    %20 = arith.subf %16, %19 : vector<8x16xf32>
    %21 = math.exp %20 : vector<8x16xf32>
    %cst_10 = arith.constant dense<0.000000e+00> : vector<8xf32>
    %22 = vector.multi_reduction <add>, %21, %cst_10 [1] : vector<8x16xf32> to vector<8xf32>
    %23 = vector.shape_cast %22 : vector<8xf32> to vector<8x1xf32>
    %cst_11 = arith.constant dense<0.000000e+00> : vector<8x8xf32>
    %24 = tpu.matmul %21, %15, %cst_11 {dimension_numbers = #tpu.dot_dimension_numbers<[1], [0], [0], [1], [0, 0, 1, 1], [], []>} : vector<8x16xf32>, vector<16x8xf32>, vector<8x8xf32> -> vector<8x8xf32>
    %25 = vector.broadcast %23 : vector<8x1xf32> to vector<8x8xf32>
    %26 = arith.divf %24, %25 : vector<8x8xf32>
    %c0_12 = arith.constant 0 : index
    %c0_13 = arith.constant 0 : index
    %27 = vector.load %arg7[%c0_12, %c0_13] : memref<8x32xf32, #tpu.memory_space<vmem>>, vector<8x8xf32>
    tpu.vector_store %arg7[%c0_12, %c0_13], %26 {strides = array<i32>} : memref<8x32xf32, #tpu.memory_space<vmem>>, vector<8x8xf32>,
    %28 = vector.extract_strided_slice %11 {offsets = [0, 8], sizes = [8, 8], strides = [1, 1]} : vector<8x32xf32> to vector<8x8xf32>
    %29 = vector.extract_strided_slice %12 {offsets = [0, 8], sizes = [16, 8], strides = [1, 1]} : vector<16x64xf32> to vector<16x8xf32>
    %30 = vector.extract_strided_slice %12 {offsets = [0, 40], sizes = [16, 8], strides = [1, 1]} : vector<16x64xf32> to vector<16x8xf32>
    %cst_14 = arith.constant dense<0.000000e+00> : vector<8x16xf32>
    %31 = tpu.matmul %28, %29, %cst_14 {dimension_numbers = #tpu.dot_dimension_numbers<[1], [1], [0], [0], [0, 0, 1, 0], [], []>} : vector<8x8xf32>, vector<16x8xf32>, vector<8x16xf32> -> vector<8x16xf32>
    %cst_15 = arith.constant dense<0xFF800000> : vector<8xf32>
    %32 = vector.multi_reduction <maximumf>, %31, %cst_15 [1] : vector<8x16xf32> to vector<8xf32>
    %33 = vector.shape_cast %32 : vector<8xf32> to vector<8x1xf32>
    %34 = vector.broadcast %33 : vector<8x1xf32> to vector<8x16xf32>
    %35 = arith.subf %31, %34 : vector<8x16xf32>
    %36 = math.exp %35 : vector<8x16xf32>
    %cst_16 = arith.constant dense<0.000000e+00> : vector<8xf32>
    %37 = vector.multi_reduction <add>, %36, %cst_16 [1] : vector<8x16xf32> to vector<8xf32>
    %38 = vector.shape_cast %37 : vector<8xf32> to vector<8x1xf32>
    %cst_17 = arith.constant dense<0.000000e+00> : vector<8x8xf32>
    %39 = tpu.matmul %36, %30, %cst_17 {dimension_numbers = #tpu.dot_dimension_numbers<[1], [0], [0], [1], [0, 0, 1, 1], [], []>} : vector<8x16xf32>, vector<16x8xf32>, vector<8x8xf32> -> vector<8x8xf32>
    %40 = vector.broadcast %38 : vector<8x1xf32> to vector<8x8xf32>
    %41 = arith.divf %39, %40 : vector<8x8xf32>
    %c0_18 = arith.constant 0 : index
    %c8 = arith.constant 8 : index
    %42 = vector.load %arg7[%c0_18, %c8] : memref<8x32xf32, #tpu.memory_space<vmem>>, vector<8x8xf32>
    tpu.vector_store %arg7[%c0_18, %c8], %41 {strides = array<i32>} : memref<8x32xf32, #tpu.memory_space<vmem>>, vector<8x8xf32>,
    %43 = vector.extract_strided_slice %11 {offsets = [0, 16], sizes = [8, 8], strides = [1, 1]} : vector<8x32xf32> to vector<8x8xf32>
    %44 = vector.extract_strided_slice %12 {offsets = [0, 16], sizes = [16, 8], strides = [1, 1]} : vector<16x64xf32> to vector<16x8xf32>
    %45 = vector.extract_strided_slice %12 {offsets = [0, 48], sizes = [16, 8], strides = [1, 1]} : vector<16x64xf32> to vector<16x8xf32>
    %cst_19 = arith.constant dense<0.000000e+00> : vector<8x16xf32>
    %46 = tpu.matmul %43, %44, %cst_19 {dimension_numbers = #tpu.dot_dimension_numbers<[1], [1], [0], [0], [0, 0, 1, 0], [], []>} : vector<8x8xf32>, vector<16x8xf32>, vector<8x16xf32> -> vector<8x16xf32>
    %cst_20 = arith.constant dense<0xFF800000> : vector<8xf32>
    %47 = vector.multi_reduction <maximumf>, %46, %cst_20 [1] : vector<8x16xf32> to vector<8xf32>
    %48 = vector.shape_cast %47 : vector<8xf32> to vector<8x1xf32>
    %49 = vector.broadcast %48 : vector<8x1xf32> to vector<8x16xf32>
    %50 = arith.subf %46, %49 : vector<8x16xf32>
    %51 = math.exp %50 : vector<8x16xf32>
    %cst_21 = arith.constant dense<0.000000e+00> : vector<8xf32>
    %52 = vector.multi_reduction <add>, %51, %cst_21 [1] : vector<8x16xf32> to vector<8xf32>
    %53 = vector.shape_cast %52 : vector<8xf32> to vector<8x1xf32>
    %cst_22 = arith.constant dense<0.000000e+00> : vector<8x8xf32>
    %54 = tpu.matmul %51, %45, %cst_22 {dimension_numbers = #tpu.dot_dimension_numbers<[1], [0], [0], [1], [0, 0, 1, 1], [], []>} : vector<8x16xf32>, vector<16x8xf32>, vector<8x8xf32> -> vector<8x8xf32>
    %55 = vector.broadcast %53 : vector<8x1xf32> to vector<8x8xf32>
    %56 = arith.divf %54, %55 : vector<8x8xf32>
    %c0_23 = arith.constant 0 : index
    %c16 = arith.constant 16 : index
    %57 = vector.load %arg7[%c0_23, %c16] : memref<8x32xf32, #tpu.memory_space<vmem>>, vector<8x8xf32>
    tpu.vector_store %arg7[%c0_23, %c16], %56 {strides = array<i32>} : memref<8x32xf32, #tpu.memory_space<vmem>>, vector<8x8xf32>,
    %58 = vector.extract_strided_slice %11 {offsets = [0, 24], sizes = [8, 8], strides = [1, 1]} : vector<8x32xf32> to vector<8x8xf32>
    %59 = vector.extract_strided_slice %12 {offsets = [0, 24], sizes = [16, 8], strides = [1, 1]} : vector<16x64xf32> to vector<16x8xf32>
    %60 = vector.extract_strided_slice %12 {offsets = [0, 56], sizes = [16, 8], strides = [1, 1]} : vector<16x64xf32> to vector<16x8xf32>
    %cst_24 = arith.constant dense<0.000000e+00> : vector<8x16xf32>
    %61 = tpu.matmul %58, %59, %cst_24 {dimension_numbers = #tpu.dot_dimension_numbers<[1], [1], [0], [0], [0, 0, 1, 0], [], []>} : vector<8x8xf32>, vector<16x8xf32>, vector<8x16xf32> -> vector<8x16xf32>
    %cst_25 = arith.constant dense<0xFF800000> : vector<8xf32>
    %62 = vector.multi_reduction <maximumf>, %61, %cst_25 [1] : vector<8x16xf32> to vector<8xf32>
    %63 = vector.shape_cast %62 : vector<8xf32> to vector<8x1xf32>
    %64 = vector.broadcast %63 : vector<8x1xf32> to vector<8x16xf32>
    %65 = arith.subf %61, %64 : vector<8x16xf32>
    %66 = math.exp %65 : vector<8x16xf32>
    %cst_26 = arith.constant dense<0.000000e+00> : vector<8xf32>
    %67 = vector.multi_reduction <add>, %66, %cst_26 [1] : vector<8x16xf32> to vector<8xf32>
    %68 = vector.shape_cast %67 : vector<8xf32> to vector<8x1xf32>
    %cst_27 = arith.constant dense<0.000000e+00> : vector<8x8xf32>
    %69 = tpu.matmul %66, %60, %cst_27 {dimension_numbers = #tpu.dot_dimension_numbers<[1], [0], [0], [1], [0, 0, 1, 1], [], []>} : vector<8x16xf32>, vector<16x8xf32>, vector<8x8xf32> -> vector<8x8xf32>
    %70 = vector.broadcast %68 : vector<8x1xf32> to vector<8x8xf32>
    %71 = arith.divf %69, %70 : vector<8x8xf32>
    %c0_28 = arith.constant 0 : index
    %c24 = arith.constant 24 : index
    %72 = vector.load %arg7[%c0_28, %c24] : memref<8x32xf32, #tpu.memory_space<vmem>>, vector<8x8xf32>
    tpu.vector_store %arg7[%c0_28, %c24], %71 {strides = array<i32>} : memref<8x32xf32, #tpu.memory_space<vmem>>, vector<8x8xf32>,
    %c0_29 = arith.constant 0 : index
    %c0_30 = arith.constant 0 : index
    %73 = vector.load %arg7[%c0_29, %c0_30] : memref<8x32xf32, #tpu.memory_space<vmem>>, vector<8x32xf32>
    %cst_31 = arith.constant dense<0.000000e+00> : vector<8x32xf32>
    %74 = tpu.matmul %73, %2, %cst_31 {dimension_numbers = #tpu.dot_dimension_numbers<[1], [0], [0], [1], [0, 0, 1, 1], [], []>} : vector<8x32xf32>, vector<32x32xf32>, vector<8x32xf32> -> vector<8x32xf32>
    %75 = arith.index_cast %4 : i32 to index
    %c0_32 = arith.constant 0 : index
    %76 = vector.load %arg6[%75, %c0_32] : memref<8x32xf32, #tpu.memory_space<vmem>>, vector<8x32xf32>
    tpu.vector_store %arg6[%75, %c0_32], %74 {strides = array<i32>} : memref<8x32xf32, #tpu.memory_space<vmem>>, vector<8x32xf32>,
    %c1_i32 = arith.constant 1 : i32
    return
  }
  func.func @transform_0(%arg0: i32) -> (i32, i32) {
    %c0_i32 = arith.constant 0 : i32
    %c0_i32_0 = arith.constant 0 : i32
    return %arg0, %c0_i32 : i32, i32
  }
  func.func @transform_1(%arg0: i32) -> (i32, i32) {
    %c0_i32 = arith.constant 0 : i32
    %c0_i32_0 = arith.constant 0 : i32
    return %arg0, %c0_i32 : i32, i32
  }
  func.func @transform_2(%arg0: i32) -> (i32, i32) {
    %c0_i32 = arith.constant 0 : i32
    %c0_i32_0 = arith.constant 0 : i32
    %c0_i32_1 = arith.constant 0 : i32
    return %c0_i32, %c0_i32_0 : i32, i32
  }
  func.func @transform_3(%arg0: i32) -> (i32, i32) {
    %c0_i32 = arith.constant 0 : i32
    %c0_i32_0 = arith.constant 0 : i32
    %c0_i32_1 = arith.constant 0 : i32
    return %c0_i32, %c0_i32_0 : i32, i32
  }
  func.func @transform_4(%arg0: i32) -> (i32, i32) {
    %c0_i32 = arith.constant 0 : i32
    %c0_i32_0 = arith.constant 0 : i32
    %c0_i32_1 = arith.constant 0 : i32
    return %c0_i32, %c0_i32_0 : i32, i32
  }
  func.func @transform_5(%arg0: i32) -> (i32, i32) {
    %c0_i32 = arith.constant 0 : i32
    %c0_i32_0 = arith.constant 0 : i32
    return %arg0, %c0_i32 : i32, i32
  }
}

module attributes {stable_mosaic.version = 11 : i64} {
  func.func @_cross_attn_kernel(%arg0: i32, %arg1: memref<8x32xf32, #tpu.memory_space<vmem>>, %arg2: memref<16x32xf32, #tpu.memory_space<vmem>>, %arg3: memref<32x32xf32, #tpu.memory_space<vmem>>, %arg4: memref<32x64xf32, #tpu.memory_space<vmem>>, %arg5: memref<32x32xf32, #tpu.memory_space<vmem>>, %arg6: memref<8x32xf32, #tpu.memory_space<vmem>>, %arg7: memref<8x32xf32, #tpu.memory_space<vmem>>) attributes {dimension_semantics = [#tpu.dimension_semantics<parallel>], iteration_bounds = array<i64: 2>, scalar_prefetch = 0 : i64, scratch_operands = 1 : i64, tpu.core_type = #tpu.core_type<tc>, window_params = [{transform_indices = @transform_0, window_bounds = array<i64: 8, 32>}, {transform_indices = @transform_1, window_bounds = array<i64: 16, 32>}, {pipeline_mode = #tpu.pipeline_mode<synchronous>, transform_indices = @transform_2, window_bounds = array<i64: 32, 32>}, {pipeline_mode = #tpu.pipeline_mode<synchronous>, transform_indices = @transform_3, window_bounds = array<i64: 32, 64>}, {pipeline_mode = #tpu.pipeline_mode<synchronous>, transform_indices = @transform_4, window_bounds = array<i64: 32, 32>}, {transform_indices = @transform_5, window_bounds = array<i64: 8, 32>}]} {
    %c0 = arith.constant 0 : index
    %c0_0 = arith.constant 0 : index
    %0 = vector.load %arg3[%c0, %c0_0] : memref<32x32xf32, #tpu.memory_space<vmem>>, vector<32x32xf32>
    %c0_1 = arith.constant 0 : index
    %c0_2 = arith.constant 0 : index
    %1 = vector.load %arg4[%c0_1, %c0_2] : memref<32x64xf32, #tpu.memory_space<vmem>>, vector<32x64xf32>
    %c0_3 = arith.constant 0 : index
    %c0_4 = arith.constant 0 : index
    %2 = vector.load %arg5[%c0_3, %c0_4] : memref<32x32xf32, #tpu.memory_space<vmem>>, vector<32x32xf32>
    %c0_i32 = arith.constant 0 : i32
    %c8_i32 = arith.constant 8 : i32
    %3 = arith.muli %c0_i32, %c8_i32 : i32
    %4 = tpu.assume_multiple %3, 8 : i32
    %c16_i32 = arith.constant 16 : i32
    %5 = arith.muli %c0_i32, %c16_i32 : i32
    %6 = tpu.assume_multiple %5, 16 : i32
    %7 = arith.index_cast %4 : i32 to index
    %c0_5 = arith.constant 0 : index
    %8 = vector.load %arg1[%7, %c0_5] : memref<8x32xf32, #tpu.memory_space<vmem>>, vector<8x32xf32>
    %9 = arith.index_cast %6 : i32 to index
    %c0_6 = arith.constant 0 : index
    %10 = vector.load %arg2[%9, %c0_6] : memref<16x32xf32, #tpu.memory_space<vmem>>, vector<16x32xf32>
    %cst = arith.constant dense<0.000000e+00> : vector<8x32xf32>
    %11 = tpu.matmul %8, %0, %cst {dimension_numbers = #tpu.dot_dimension_numbers<[1], [0], [0], [1], [0, 0, 1, 1], [], []>} : vector<8x32xf32>, vector<32x32xf32>, vector<8x32xf32> -> vector<8x32xf32>
    %cst_7 = arith.constant dense<0.000000e+00> : vector<16x64xf32>
    %12 = tpu.matmul %10, %1, %cst_7 {dimension_numbers = #tpu.dot_dimension_numbers<[1], [0], [0], [1], [0, 0, 1, 1], [], []>} : vector<16x32xf32>, vector<32x64xf32>, vector<16x64xf32> -> vector<16x64xf32>
    %13 = vector.extract_strided_slice %11 {offsets = [0, 0], sizes = [8, 8], strides = [1, 1]} : vector<8x32xf32> to vector<8x8xf32>
    %14 = vector.extract_strided_slice %12 {offsets = [0, 0], sizes = [16, 8], strides = [1, 1]} : vector<16x64xf32> to vector<16x8xf32>
    %15 = vector.extract_strided_slice %12 {offsets = [0, 32], sizes = [16, 8], strides = [1, 1]} : vector<16x64xf32> to vector<16x8xf32>
    %cst_8 = arith.constant dense<0.000000e+00> : vector<8x16xf32>
    %16 = tpu.matmul %13, %14, %cst_8 {dimension_numbers = #tpu.dot_dimension_numbers<[1], [1], [0], [0], [0, 0, 1, 0], [], []>} : vector<8x8xf32>, vector<16x8xf32>, vector<8x16xf32> -> vector<8x16xf32>
    %cst_9 = arith.constant dense<0xFF800000> : vector<8xf32>
    %17 = vector.multi_reduction <maximumf>, %16, %cst_9 [1] : vector<8x16xf32> to vector<8xf32>
    %18 = vector.shape_cast %17 : vector<8xf32> to vector<8x1xf32>
    %19 = vector.broadcast %18 : vector<8x1xf32> to vector<8x16xf32>
    %20 = arith.subf %16, %19 : vector<8x16xf32>
    %21 = math.exp %20 : vector<8x16xf32>
    %cst_10 = arith.constant dense<0.000000e+00> : vector<8xf32>
    %22 = vector.multi_reduction <add>, %21, %cst_10 [1] : vector<8x16xf32> to vector<8xf32>
    %23 = vector.shape_cast %22 : vector<8xf32> to vector<8x1xf32>
    %cst_11 = arith.constant dense<0.000000e+00> : vector<8x8xf32>
    %24 = tpu.matmul %21, %15, %cst_11 {dimension_numbers = #tpu.dot_dimension_numbers<[1], [0], [0], [1], [0, 0, 1, 1], [], []>} : vector<8x16xf32>, vector<16x8xf32>, vector<8x8xf32> -> vector<8x8xf32>
    %25 = vector.broadcast %23 : vector<8x1xf32> to vector<8x8xf32>
    %26 = arith.divf %24, %25 : vector<8x8xf32>
    %c0_12 = arith.constant 0 : index
    %c0_13 = arith.constant 0 : index
    %27 = vector.load %arg7[%c0_12, %c0_13] : memref<8x32xf32, #tpu.memory_space<vmem>>, vector<8x8xf32>
    tpu.vector_store %arg7[%c0_12, %c0_13], %26 {strides = array<i32>} : memref<8x32xf32, #tpu.memory_space<vmem>>, vector<8x8xf32>,
    %28 = vector.extract_strided_slice %11 {offsets = [0, 8], sizes = [8, 8], strides = [1, 1]} : vector<8x32xf32> to vector<8x8xf32>
    %29 = vector.extract_strided_slice %12 {offsets = [0, 8], sizes = [16, 8], strides = [1, 1]} : vector<16x64xf32> to vector<16x8xf32>
    %30 = vector.extract_strided_slice %12 {offsets = [0, 40], sizes = [16, 8], strides = [1, 1]} : vector<16x64xf32> to vector<16x8xf32>
    %cst_14 = arith.constant dense<0.000000e+00> : vector<8x16xf32>
    %31 = tpu.matmul %28, %29, %cst_14 {dimension_numbers = #tpu.dot_dimension_numbers<[1], [1], [0], [0], [0, 0, 1, 0], [], []>} : vector<8x8xf32>, vector<16x8xf32>, vector<8x16xf32> -> vector<8x16xf32>
    %cst_15 = arith.constant dense<0xFF800000> : vector<8xf32>
    %32 = vector.multi_reduction <maximumf>, %31, %cst_15 [1] : vector<8x16xf32> to vector<8xf32>
    %33 = vector.shape_cast %32 : vector<8xf32> to vector<8x1xf32>
    %34 = vector.broadcast %33 : vector<8x1xf32> to vector<8x16xf32>
    %35 = arith.subf %31, %34 : vector<8x16xf32>
    %36 = math.exp %35 : vector<8x16xf32>
    %cst_16 = arith.constant dense<0.000000e+00> : vector<8xf32>
    %37 = vector.multi_reduction <add>, %36, %cst_16 [1] : vector<8x16xf32> to vector<8xf32>
    %38 = vector.shape_cast %37 : vector<8xf32> to vector<8x1xf32>
    %cst_17 = arith.constant dense<0.000000e+00> : vector<8x8xf32>
    %39 = tpu.matmul %36, %30, %cst_17 {dimension_numbers = #tpu.dot_dimension_numbers<[1], [0], [0], [1], [0, 0, 1, 1], [], []>} : vector<8x16xf32>, vector<16x8xf32>, vector<8x8xf32> -> vector<8x8xf32>
    %40 = vector.broadcast %38 : vector<8x1xf32> to vector<8x8xf32>
    %41 = arith.divf %39, %40 : vector<8x8xf32>
    %c0_18 = arith.constant 0 : index
    %c8 = arith.constant 8 : index
    %42 = vector.load %arg7[%c0_18, %c8] : memref<8x32xf32, #tpu.memory_space<vmem>>, vector<8x8xf32>
    tpu.vector_store %arg7[%c0_18, %c8], %41 {strides = array<i32>} : memref<8x32xf32, #tpu.memory_space<vmem>>, vector<8x8xf32>,
    %43 = vector.extract_strided_slice %11 {offsets = [0, 16], sizes = [8, 8], strides = [1, 1]} : vector<8x32xf32> to vector<8x8xf32>
    %44 = vector.extract_strided_slice %12 {offsets = [0, 16], sizes = [16, 8], strides = [1, 1]} : vector<16x64xf32> to vector<16x8xf32>
    %45 = vector.extract_strided_slice %12 {offsets = [0, 48], sizes = [16, 8], strides = [1, 1]} : vector<16x64xf32> to vector<16x8xf32>
    %cst_19 = arith.constant dense<0.000000e+00> : vector<8x16xf32>
    %46 = tpu.matmul %43, %44, %cst_19 {dimension_numbers = #tpu.dot_dimension_numbers<[1], [1], [0], [0], [0, 0, 1, 0], [], []>} : vector<8x8xf32>, vector<16x8xf32>, vector<8x16xf32> -> vector<8x16xf32>
    %cst_20 = arith.constant dense<0xFF800000> : vector<8xf32>
    %47 = vector.multi_reduction <maximumf>, %46, %cst_20 [1] : vector<8x16xf32> to vector<8xf32>
    %48 = vector.shape_cast %47 : vector<8xf32> to vector<8x1xf32>
    %49 = vector.broadcast %48 : vector<8x1xf32> to vector<8x16xf32>
    %50 = arith.subf %46, %49 : vector<8x16xf32>
    %51 = math.exp %50 : vector<8x16xf32>
    %cst_21 = arith.constant dense<0.000000e+00> : vector<8xf32>
    %52 = vector.multi_reduction <add>, %51, %cst_21 [1] : vector<8x16xf32> to vector<8xf32>
    %53 = vector.shape_cast %52 : vector<8xf32> to vector<8x1xf32>
    %cst_22 = arith.constant dense<0.000000e+00> : vector<8x8xf32>
    %54 = tpu.matmul %51, %45, %cst_22 {dimension_numbers = #tpu.dot_dimension_numbers<[1], [0], [0], [1], [0, 0, 1, 1], [], []>} : vector<8x16xf32>, vector<16x8xf32>, vector<8x8xf32> -> vector<8x8xf32>
    %55 = vector.broadcast %53 : vector<8x1xf32> to vector<8x8xf32>
    %56 = arith.divf %54, %55 : vector<8x8xf32>
    %c0_23 = arith.constant 0 : index
    %c16 = arith.constant 16 : index
    %57 = vector.load %arg7[%c0_23, %c16] : memref<8x32xf32, #tpu.memory_space<vmem>>, vector<8x8xf32>
    tpu.vector_store %arg7[%c0_23, %c16], %56 {strides = array<i32>} : memref<8x32xf32, #tpu.memory_space<vmem>>, vector<8x8xf32>,
    %58 = vector.extract_strided_slice %11 {offsets = [0, 24], sizes = [8, 8], strides = [1, 1]} : vector<8x32xf32> to vector<8x8xf32>
    %59 = vector.extract_strided_slice %12 {offsets = [0, 24], sizes = [16, 8], strides = [1, 1]} : vector<16x64xf32> to vector<16x8xf32>
    %60 = vector.extract_strided_slice %12 {offsets = [0, 56], sizes = [16, 8], strides = [1, 1]} : vector<16x64xf32> to vector<16x8xf32>
    %cst_24 = arith.constant dense<0.000000e+00> : vector<8x16xf32>
    %61 = tpu.matmul %58, %59, %cst_24 {dimension_numbers = #tpu.dot_dimension_numbers<[1], [1], [0], [0], [0, 0, 1, 0], [], []>} : vector<8x8xf32>, vector<16x8xf32>, vector<8x16xf32> -> vector<8x16xf32>
    %cst_25 = arith.constant dense<0xFF800000> : vector<8xf32>
    %62 = vector.multi_reduction <maximumf>, %61, %cst_25 [1] : vector<8x16xf32> to vector<8xf32>
    %63 = vector.shape_cast %62 : vector<8xf32> to vector<8x1xf32>
    %64 = vector.broadcast %63 : vector<8x1xf32> to vector<8x16xf32>
    %65 = arith.subf %61, %64 : vector<8x16xf32>
    %66 = math.exp %65 : vector<8x16xf32>
    %cst_26 = arith.constant dense<0.000000e+00> : vector<8xf32>
    %67 = vector.multi_reduction <add>, %66, %cst_26 [1] : vector<8x16xf32> to vector<8xf32>
    %68 = vector.shape_cast %67 : vector<8xf32> to vector<8x1xf32>
    %cst_27 = arith.constant dense<0.000000e+00> : vector<8x8xf32>
    %69 = tpu.matmul %66, %60, %cst_27 {dimension_numbers = #tpu.dot_dimension_numbers<[1], [0], [0], [1], [0, 0, 1, 1], [], []>} : vector<8x16xf32>, vector<16x8xf32>, vector<8x8xf32> -> vector<8x8xf32>
    %70 = vector.broadcast %68 : vector<8x1xf32> to vector<8x8xf32>
    %71 = arith.divf %69, %70 : vector<8x8xf32>
    %c0_28 = arith.constant 0 : index
    %c24 = arith.constant 24 : index
    %72 = vector.load %arg7[%c0_28, %c24] : memref<8x32xf32, #tpu.memory_space<vmem>>, vector<8x8xf32>
    tpu.vector_store %arg7[%c0_28, %c24], %71 {strides = array<i32>} : memref<8x32xf32, #tpu.memory_space<vmem>>, vector<8x8xf32>,
    %c0_29 = arith.constant 0 : index
    %c0_30 = arith.constant 0 : index
    %73 = vector.load %arg7[%c0_29, %c0_30] : memref<8x32xf32, #tpu.memory_space<vmem>>, vector<8x32xf32>
    %cst_31 = arith.constant dense<0.000000e+00> : vector<8x32xf32>
    %74 = tpu.matmul %73, %2, %cst_31 {dimension_numbers = #tpu.dot_dimension_numbers<[1], [0], [0], [1], [0, 0, 1, 1], [], []>} : vector<8x32xf32>, vector<32x32xf32>, vector<8x32xf32> -> vector<8x32xf32>
    %75 = arith.index_cast %4 : i32 to index
    %c0_32 = arith.constant 0 : index
    %76 = vector.load %arg6[%75, %c0_32] : memref<8x32xf32, #tpu.memory_space<vmem>>, vector<8x32xf32>
    tpu.vector_store %arg6[%75, %c0_32], %74 {strides = array<i32>} : memref<8x32xf32, #tpu.memory_space<vmem>>, vector<8x32xf32>,
    %c1_i32 = arith.constant 1 : i32
    return
  }
  func.func @transform_0(%arg0: i32) -> (i32, i32) {
    %c0_i32 = arith.constant 0 : i32
    %c0_i32_0 = arith.constant 0 : i32
    return %arg0, %c0_i32 : i32, i32
  }
  func.func @transform_1(%arg0: i32) -> (i32, i32) {
    %c0_i32 = arith.constant 0 : i32
    %c0_i32_0 = arith.constant 0 : i32
    return %arg0, %c0_i32 : i32, i32
  }
  func.func @transform_2(%arg0: i32) -> (i32, i32) {
    %c0_i32 = arith.constant 0 : i32
    %c0_i32_0 = arith.constant 0 : i32
    %c0_i32_1 = arith.constant 0 : i32
    return %c0_i32, %c0_i32_0 : i32, i32
  }
  func.func @transform_3(%arg0: i32) -> (i32, i32) {
    %c0_i32 = arith.constant 0 : i32
    %c0_i32_0 = arith.constant 0 : i32
    %c0_i32_1 = arith.constant 0 : i32
    return %c0_i32, %c0_i32_0 : i32, i32
  }
  func.func @transform_4(%arg0: i32) -> (i32, i32) {
    %c0_i32 = arith.constant 0 : i32
    %c0_i32_0 = arith.constant 0 : i32
    %c0_i32_1 = arith.constant 0 : i32
    return %c0_i32, %c0_i32_0 : i32, i32
  }
  func.func @transform_5(%arg0: i32) -> (i32, i32) {
    %c0_i32 = arith.constant 0 : i32
    %c0_i32_0 = arith.constant 0 : i32
    return %arg0, %c0_i32 : i32, i32
  }
}

</mosaic_0001>

<bundles_post_ra>
// kernel: tpu_custom_call.1
= control target key start
LH: loop header
LB: loop body
LE: loop exit
PB: predicated region body
PF: predicated region fallthrough
CT: control target
= control target key end

     0   :  { %s2468_s0 = inlined_call_operand.hbm [shape: f32[16,32], index: 0, kind: input, shape index: {}]   ;;  %s2469_s1 = inlined_call_operand.hbm [shape: f32[32,32], index: 1, kind: input, shape index: {}]   ;;  %s2470_s2 = inlined_call_operand.hbm [shape: f32[32,32], index: 2, kind: input, shape index: {}]   ;;  %s2471_s3 = inlined_call_operand.hbm [shape: f32[32,64], index: 3, kind: input, shape index: {}]   ;;  %s2472_s4 = inlined_call_operand.hbm [shape: f32[32,32], index: 4, kind: input, shape index: {}]   ;;  %s2473_s5 = inlined_call_operand.hbm [shape: f32[16,32], index: 5, kind: output, shape index: {}]  }
   0x1   :  { %2479 = sst [smem:[#allocation18_spill]] %s2468_s0 }
   0x2   :  { %10 = vsyncpa [#allocation4], 0 }
   0x3   :  { %12 = vsyncpa [#allocation4 + $0x1], 0 }
   0x4   :  { %13 = vsyncpa [#allocation7], 0 }
   0x5   :  { %15 = vsyncpa [#allocation7 + $0x1], 0 }
   0x6   :  { %16 = vsyncpa [#allocation10], 0 }
   0x7   :  { %17 = vsyncpa [#allocation5], 0 }
   0x8   :  { %19 = vsyncpa [#allocation5 + $0x1], 0  ;;  %s2053_s18 = smov 0   ;;  %s2055_s19 = smov 0  }
   0x9   :  { %s2057_s20 = smov 0   ;;  %s2059_s21 = smov 0  }
   0xa LB: > { %s2074_s22 = sadd.s32 4294967295, %s2000_s21   ;;  %s1410_s23 = sadd.s32 4294967294, %s2000_s21   ;;  %s2000_s21 = sphi %s2059_s21, %s2504_s21   ;;  %s1996_s20 = sphi %s2057_s20, %s2503_s20   ;;  %s1992_s19 = sphi %s2055_s19, %s2502_s19   ;;  %s1988_s18 = sphi %s2053_s18, %s2501_s18  }
   0xb   : > { %p45_p0 = scmp.ne.s32.totalorder %s1992_s19, %s1988_s18  ;;  %p2474_p1 = scmp.eq.s32.totalorder %s2074_s22, 0 }
   0xc   : > { %p164_p3 = scmp.eq.s32.totalorder %s1410_s23, 1  ;;  %p1411_p5 = scmp.ge.s32.totalorder %s2000_s21, 1 }
   0xd   : > { %p2083_p4 = por %p2474_p1, %p45_p0  ;;  %p171_p7 = scmp.lt.s32.totalorder %s2000_s21, 3 }
   0xe   : > { %p2088_p6 = por %p164_p3, %p45_p0  ;;  %s2002_s27 = smov [#allocation8]  }
   0xf   : > { %s2480_s24 = scalar_select %p2083_p4, 1, 0 }
  0x10   : > { %s2481_s25 = scalar_select %p2088_p6, 1, 0 }
  0x11   : > { %p2093_p8 = pnand %p1411_p5, %p171_p7  ;;  %s183_s28 = sshll.u32 %s2002_s27, 4  ;;  %s2097_s28 = int_to_ptr.vmem [resolvable:$true] %s183_s28 }
  0x12   : > { %s2003_s30 = smov [#allocation9]   ;;  %s2004_s7 = smov [#allocation11]  }
  0x13   : > { %s2482_s26 = scalar_select %p2093_p8, 1, 0 }
  0x14   : > { %p1648_p9 = pneg %p2093_p8  ;;  %s196_s6 = sshll.u32 %s2003_s30, 4  ;;  %s2108_s6 = int_to_ptr.vmem [resolvable:$true] %s196_s6 }
  0x15   : > { %s2110_s8 = sshll.u32 %s2004_s7, 4  ;;  %s1778_s11 = scalar_lea.hbm %s2470_s2, 512  ;;  %s210_s8 = int_to_ptr.vmem [resolvable:$true] %s2110_s8 }
  0x16   : > { %p2104_p11 = pnand %p1648_p9, %p2474_p1  ;;  %p1779_p12 = scmp.ne.s32.totalorder %s2470_s2, %s1778_s11 }
  0x17   : > { %p1785_p5 = scmp.lt.u32.totalorder %s1778_s11, %s2470_s2 }
  0x18   : > { %p2120_p13 = pneg %p2104_p11 }
  0x1a   : > { %p1781_p0 = pnand %p2120_p13, %p1779_p12 }
  0x1c   : > { %p1782_p3 = pneg %p1781_p0 }
  0x1e   : > { %p1787_p7 = pnand %p1785_p5, %p1782_p3 }
  0x20   : > { %1790 = shalt.err (!%p1787_p7)
}
  0x21   : > { %s1791_s17 = scalar_lea.vmem %s2097_s28, 512  ;;  %p1799_p2 = scmp.lt.s32.totalorder %s2097_s28, %s2097_s28 }
  0x22   : > { %p1792_p9 = scmp.ne.s32.totalorder %s2097_s28, %s1791_s17  ;;  %p1800_p6 = scmp.lt.s32.totalorder %s1791_s17, %s1791_s17 }
  0x24   : > { %p1794_p10 = pnand %p1792_p9, %p2120_p13  ;;  %p1801_p12 = por %p1800_p6, %p1799_p2 }
  0x26   : > { %p1795_p1 = pneg %p1794_p10 }
  0x28   : > { %p1802_p0 = pnand %p1801_p12, %p1795_p1 }
  0x2a   : > { %1805 = shalt.err (!%p1802_p0)
}
  0x2b   : > { %s2477_s23 = smov 128   ;;  %s2478_s27 = smov 8  }
  0x2c   : > { %1651 = dma.hbm_to_vmem [thread:$0]  (!%p2104_p11), %s2470_s2, 512, %s2097_s28, [#allocation7], %s2477_s23, %s2477_s23, %s2478_s27  }
  0x2d   : > { %s1806_s11 = scalar_lea.hbm %s2471_s3, 512 }
  0x2e   : > { %p1807_p1 = scmp.ne.s32.totalorder %s2471_s3, %s1806_s11  ;;  %p1813_p10 = scmp.lt.u32.totalorder %s1806_s11, %s2471_s3 }
  0x30   : > { %p1809_p2 = pnand %p1807_p1, %p2120_p13 }
  0x32   : > { %p1810_p6 = pneg %p1809_p2 }
  0x34   : > { %p1815_p3 = pnand %p1813_p10, %p1810_p6 }
  0x36   : > { %1818 = shalt.err (!%p1815_p3)
}
  0x37   : > { %s1819_s28 = scalar_lea.vmem %s2108_s6, 512  ;;  %p1827_p12 = scmp.lt.s32.totalorder %s2108_s6, %s2108_s6 }
  0x38   : > { %p1820_p5 = scmp.ne.s32.totalorder %s2108_s6, %s1819_s28  ;;  %p1828_p0 = scmp.lt.s32.totalorder %s1819_s28, %s1819_s28 }
  0x3a   : > { %p1822_p7 = pnand %p1820_p5, %p2120_p13  ;;  %p1829_p1 = por %p1828_p0, %p1827_p12 }
  0x3c   : > { %p1823_p9 = pneg %p1822_p7 }
  0x3e   : > { %p1830_p2 = pnand %p1829_p1, %p1823_p9 }
  0x40   : > { %1833 = shalt.err (!%p1830_p2)
}
  0x41   : > { %1654 = dma.hbm_to_vmem [thread:$0]  (!%p2104_p11), %s2471_s3, 512, %s2108_s6, [#allocation10], %s2477_s23, %s2477_s23, %s2478_s27  }
  0x42   : > { %s1834_s10 = scalar_lea.hbm %s2472_s4, 512 }
  0x43   : > { %p1835_p6 = scmp.ne.s32.totalorder %s2472_s4, %s1834_s10  ;;  %p1841_p5 = scmp.lt.u32.totalorder %s1834_s10, %s2472_s4 }
  0x45   : > { %p1837_p10 = pnand %p1835_p6, %p2120_p13 }
  0x47   : > { %p1838_p3 = pneg %p1837_p10 }
  0x49   : > { %p1843_p7 = pnand %p1841_p5, %p1838_p3 }
  0x4b   : > { %1846 = shalt.err (!%p1843_p7)
}
  0x4c   : > { %s1847_s16 = scalar_lea.vmem %s210_s8, 512  ;;  %p1855_p1 = scmp.lt.s32.totalorder %s210_s8, %s210_s8 }
  0x4d   : > { %p1848_p9 = scmp.ne.s32.totalorder %s210_s8, %s1847_s16  ;;  %p1856_p2 = scmp.lt.s32.totalorder %s1847_s16, %s1847_s16 }
  0x4f   : > { %p1850_p12 = pnand %p1848_p9, %p2120_p13  ;;  %p1857_p4 = por %p1856_p2, %p1855_p1 }
  0x51   : > { %p1851_p0 = pneg %p1850_p12 }
  0x53   : > { %p1858_p8 = pnand %p1857_p4, %p1851_p0 }
  0x55   : > { %1861 = shalt.err (!%p1858_p8)
}
  0x56   : > { %1657 = dma.hbm_to_vmem [thread:$0]  (!%p2104_p11), %s2472_s4, 512, %s210_s8, [#allocation10], %s2477_s23, %s2477_s23, %s2478_s27  }
  0x57   : > { %s2193_s14 = sadd.s32 1, %s2000_s21   ;;  %s32_s17 = sadd.s32 1, %s1996_s20 }
  0x58   : > { %s29_s29 = ssub.s32 %s2000_s21, %s2193_s14  ;;  %p39_p8 = scmp.ne.s32.totalorder %s1996_s20, %s1992_s19 }
  0x59   : > { %p30_p4 = scmp.eq.s32.totalorder %s29_s29, 0  ;;  %p40_p13 = scmp.eq.s32.totalorder %s2000_s21, 0 }
  0x5a   : > { %p1672_p6 = scmp.lt.s32.totalorder %s2000_s21, 2  ;;  %p2485_p3 = scmp.eq.s32.totalorder %s2074_s22, 1 }
  0x5b   : > { %s2203_s30 = scalar_select %p30_p4, %s1996_s20, %s32_s17  }
  0x5c   : > { %p41_p10 = por %p40_p13, %p39_p8  ;;  %p2207_p5 = por %p2485_p3, %p39_p8 }
  0x5d   : > { %s2212_s9 = sand.u32 1, %s1996_s20   ;;  %s1417_s8 = sshll.u32 %s2000_s21, 7 }
  0x5e   : > { %s1416_s10 = sshll.u32 %s2212_s9, 3  ;;  %s2487_s0 = sld [smem:[#allocation18_spill]] }
  0x5f   : > { %s227_s15 = scalar_lea.vmem [#allocation3], %s1416_s10  ;;  %p2221_p11 = pnand %p1672_p6, %p41_p10 }
  0x60   : > { %s234_s16 = sshll.u32 %s227_s15, 4  ;;  %s1418_s28 = sshll.u32 %s2212_s9, 4  ;;  %s2225_s16 = int_to_ptr.vmem [resolvable:$true] %s234_s16 }
  0x61   : > { %s224_s29 = scalar_lea.sflag [#allocation4], %s2212_s9  ;;  %p1864_p9 = pneg %p2221_p11 }
  0x64   : > { %s2219_s13 = scalar_lea.hbm %s2487_s0, %s1417_s8  ;;  %s1867_s11 = scalar_lea.hbm %s2487_s0, 256 }
  0x65   : > { %s1862_s17 = scalar_lea.hbm %s2219_s13, 128  ;;  %p1868_p1 = scmp.lt.u32.totalorder %s2219_s13, %s2487_s0 }
  0x66   : > { %p1863_p7 = scmp.ne.s32.totalorder %s2219_s13, %s1862_s17  ;;  %p1869_p2 = scmp.lt.u32.totalorder %s1867_s11, %s1862_s17 }
  0x67   : > { %p1871_p8 = scmp.lt.u32.totalorder %s1862_s17, %s2219_s13 }
  0x68   : > { %p1865_p12 = pnand %p1864_p9, %p1863_p7  ;;  %p1870_p4 = por %p1869_p2, %p1868_p1 }
  0x6a   : > { %p1866_p0 = pneg %p1865_p12  ;;  %p1872_p13 = por %p1871_p8, %p1870_p4 }
  0x6c   : > { %p1873_p6 = pnand %p1872_p13, %p1866_p0 }
  0x6e   : > { %1876 = shalt.err (!%p1873_p6)
}
  0x6f   : > { %s1877_s23 = scalar_lea.vmem %s2225_s16, 128  ;;  %s2007_s8 = smov [#allocation3]  }
  0x70   : > { %p1878_p10 = scmp.ne.s32.totalorder %s2225_s16, %s1877_s23  ;;  %s1882_s10 = sshll.u32 %s2007_s8, 4  ;;  %s1883_s10 = int_to_ptr.vmem [resolvable:$false] %s1882_s10 }
  0x71   : > { %s1884_s12 = scalar_lea.vmem %s1883_s10, 256  ;;  %p1885_p12 = scmp.lt.s32.totalorder %s2225_s16, %s1883_s10 }
  0x72   : > { %p1880_p3 = pnand %p1878_p10, %p1864_p9  ;;  %p1886_p1 = scmp.lt.s32.totalorder %s1884_s12, %s1877_s23 }
  0x74   : > { %p1881_p7 = pneg %p1880_p3  ;;  %p1887_p2 = por %p1886_p1, %p1885_p12 }
  0x76   : > { %p1888_p4 = pnand %p1887_p2, %p1881_p7 }
  0x78   : > { %1891 = shalt.err (!%p1888_p4)
}
  0x79   : > { %1661 = dma.hbm_to_vmem [thread:$0]  (!%p2221_p11), %s2219_s13, 128, %s2225_s16, %s224_s29  }
  0x7a   : > { %s245_s17 = scalar_lea.vmem [#allocation6], %s1418_s28  ;;  %s241_s15 = sand.u32 1, %s2000_s21  }
  0x7b   : > { %s252_s11 = sshll.u32 %s245_s17, 4  ;;  %s1452_s8 = sshll.u32 %s2000_s21, 8  ;;  %s2257_s11 = int_to_ptr.vmem [resolvable:$true] %s252_s11 }
  0x7c   : > { %s2263_s12 = scalar_lea.hbm %s2469_s1, %s1452_s8  ;;  %s2265_s27 = scalar_lea.sflag [#allocation7], %s241_s15 }
  0x7d   : > { %s1892_s0 = scalar_lea.hbm %s2263_s12, 256  ;;  %s1897_s16 = scalar_lea.hbm %s2469_s1, 512 }
  0x7e   : > { %p1893_p0 = scmp.ne.s32.totalorder %s2263_s12, %s1892_s0  ;;  %p1898_p6 = scmp.lt.u32.totalorder %s2263_s12, %s2469_s1 }
  0x7f   : > { %p1899_p10 = scmp.lt.u32.totalorder %s1897_s16, %s1892_s0  ;;  %p1901_p7 = scmp.lt.u32.totalorder %s1892_s0, %s2263_s12 }
  0x80   : > { %p1895_p8 = pnand %p1893_p0, %p1864_p9 }
  0x81   : > { %p1900_p3 = por %p1899_p10, %p1898_p6 }
  0x82   : > { %p1896_p13 = pneg %p1895_p8 }
  0x83   : > { %p1902_p12 = por %p1901_p7, %p1900_p3 }
  0x85   : > { %p1903_p1 = pnand %p1902_p12, %p1896_p13 }
  0x87   : > { %1906 = shalt.err (!%p1903_p1)
}
  0x88   : > { %s1907_s17 = scalar_lea.vmem %s2257_s11, 256  ;;  %s2008_s15 = smov [#allocation6]  }
  0x89   : > { %p1908_p2 = scmp.ne.s32.totalorder %s2257_s11, %s1907_s17  ;;  %s1912_s8 = sshll.u32 %s2008_s15, 4  ;;  %s1913_s8 = int_to_ptr.vmem [resolvable:$false] %s1912_s8 }
  0x8a   : > { %s1914_s23 = scalar_lea.vmem %s1913_s8, 512  ;;  %p1915_p8 = scmp.lt.s32.totalorder %s2257_s11, %s1913_s8 }
  0x8b   : > { %p1910_p4 = pnand %p1908_p2, %p1864_p9  ;;  %p1916_p6 = scmp.lt.s32.totalorder %s1914_s23, %s1907_s17 }
  0x8d   : > { %p1911_p0 = pneg %p1910_p4  ;;  %p1917_p10 = por %p1916_p6, %p1915_p8 }
  0x8f   : > { %p1918_p3 = pnand %p1917_p10, %p1911_p0 }
  0x91   : > { %1921 = shalt.err (!%p1918_p3)
}
  0x92   : > { %s2489_s0 = smov 8   ;;  %s2490_s10 = smov 128  }
  0x93   : > { %1664 = dma.hbm_to_vmem [thread:$0]  (!%p2221_p11), %s2263_s12, 256, %s2257_s11, %s2265_s27, %s2490_s10, %s2490_s10, %s2489_s0  }
  0x94   : > { %p2491_p9 = scmp.ne.s32.totalorder %s2482_s26, 0 }
  0x95   : > { %s2297_s9 = sand.u32 (!%p2491_p9), 1, %s1992_s19   ;;  %p2492_p13 = scmp.ne.s32.totalorder (!%p2491_p9), %s2480_s24, 0 }
  0x96   : > { %264 = sbr.rel (%p2491_p9) target bundleno = 2101 (0x835), region = 40  ;;  %s1422_s13 = sshll.u32 (!%p2491_p9), %s2297_s9, 3 }
  0x97   : > { %s267_s16 = scalar_lea.sflag (!%p2491_p9), [#allocation4], %s2297_s9  ;;  %s2303_s6 = scalar_lea.vmem (!%p2491_p9), [#allocation3], %s1422_s13 }
  0x9d   : > { %1967 = dma.done.wait (%p2492_p13), %s267_s16, 128  }
  0x9e   : > { %1969 = vsyncadd (%p2492_p13), %s267_s16, 4294967168  ;;  %s275_s26 = sand.u32 1, %s2074_s22   ;;  %s1423_s27 = sshll.u32 %s2297_s9, 4 }
  0x9f   : > { %s276_s11 = scalar_lea.sflag [#allocation7], %s275_s26  ;;  %s2311_s12 = scalar_lea.vmem [#allocation6], %s1423_s27 }
  0xa0   : > { %1971 = dma.done.wait (%p2492_p13), %s276_s11, 256  }
  0xa1   : > { %1973 = vsyncadd (%p2492_p13), %s276_s11, 4294967040  ;;  %p2493_p11 = scmp.eq.s32.totalorder %s2074_s22, 0 }
  0xa3   : > { %1975 = dma.done.wait (%p2493_p11), [#allocation7], 512   ;;  %p2494_p7 = pmov %p2493_p11 }
  0xa5   : > { %1977 = vsyncadd (%p2494_p7), [#allocation7], 4294966784  ;;  %p2495_p12 = pmov %p2494_p7 }
  0xa6   : > { %p2496_p1 = pmov %p2494_p7 }
  0xa7   : > { %1979 = dma.done.wait (%p2495_p12), [#allocation10], 1024  }
  0xa8   : > { %1981 = vsyncadd (%p2496_p1), [#allocation10], 4294966272  ;;  %v2009_v0 = vmov 0.0|0.0   ;;  %vm2010_vm0 = vmmov 0   ;;  %v2011_v1 = vmov 0.0   ;;  %vm339_vm1 = vcmask 261120  }
  0xa9   : > { %1582 = vmatprep.subr.bf16.mxu0 %v2009_v0  ;;  %1501 = vmatprep.mubr.msk.f32.mxu0 %vm2010_vm0, %v2011_v1  ;;  %v328_v2 = vld [vmem:[#allocation9] sm:$0xff]  ;;  %v329_v3 = vld [vmem:[#allocation9 + $0x8] sm:$0xff]  ;;  %v330_v4 = vld [vmem:[#allocation9 + $0x10] sm:$0xff]  ;;  %vm494_vm2 = vcmask 64512   ;;  %s2012_s24 = smov 120   ;;  %s2013_s28 = smov 112  }
  0xaa   : > { %v1588_v5 = vpack.c.bf16 %v329_v3, %v328_v2  ;;  %v331_v6 = vld [vmem:[#allocation9 + $0x18] sm:$0xff]  ;;  %v337_v7 = vld [vmem:[%s2311_s12] sm:$0xff]  ;;  %v325_v10 = vld [vmem:[#allocation8 + $0x8] sm:$0xff]  ;;  %s2014_s29 = smov 88   ;;  %vm574_vm4 = vcmask 130048   ;;  %s2015_s17 = smov 96  }
  0xab   : > { %v324_v8 = vld [vmem:[#allocation8] sm:$0xff]  ;;  %v1592_v9 = vpack.c.bf16 %v331_v6, %v330_v4  ;;  %1512 = vmatprep.mubr.msk.f32.mxu1 %vm339_vm1, %v337_v7  ;;  %v326_v11 = vld [vmem:[#allocation8 + $0x10] sm:$0xff]  ;;  %v327_v13 = vld [vmem:[#allocation8 + $0x18] sm:$0xff]  ;;  %s2016_s15 = smov 80   ;;  %s2017_s8 = smov 72   ;;  %vm842_vm5 = vcmask 130112  }
  0xac   : > { %1589 = vmatprep.subr.bf16.mxu1 %v1588_v5  ;;  %v1583_v12 = vpack.c.bf16 %v325_v10, %v324_v8  ;;  %v1586_v14 = vpack.c.bf16 %v327_v13, %v326_v11  ;;  %v338_v15 = vld [vmem:[%s2311_s12 + $0x8] sm:$0xff]  ;;  %vm2343_vm3 = vmpackc.low %vm494_vm2, %vm494_vm2  ;;  %s2018_s23 = smov 104   ;;  %s2019_s0 = smov 16   ;;  %vm1020_vm6 = vcmask 195712   ;;  %vm1198_vm7 = vcmask 261312  }
  0xad   : > { %1591 = vmatpush3.bf16.msra.mxu1 %v1588_v5  ;;  %v336_v16 = vld [vmem:[%s2303_s6] sm:$0xff]  ;;  %s2020_s10 = smov 8   ;;  %s2021_s16 = smov 24  }
  0xae   : > { %1593 = vmatprep.subr.bf16.mxu1 %v1592_v9  ;;  %1584 = vmatpush3.bf16.msra.mxu0 %v1583_v12  ;;  %s1449_s6 = sshll.u32 %s2074_s22, 7  ;;  %s322_s26 = scalar_lea.vmem [#allocation12], %s1422_s13 }
  0xaf   : > { %1585 = vmatprep.subr.bf16.mxu0 %v2009_v0  ;;  %s1289_s27 = sshll.u32 %s322_s26, 4  ;;  %s2022_s22 = smov [#allocation12]   ;;  %s2425_s27 = int_to_ptr.vmem [resolvable:$true] %s1289_s27 }
  0xb0   : > { %s1926_s13 = sshll.u32 %s2022_s22, 4  ;;  %s1927_s13 = int_to_ptr.vmem [resolvable:$false] %s1926_s13 }
  0xb1   : > { %1595 = vmatpush3.bf16.msra.mxu1 %v1592_v9  ;;  %p1929_p8 = scmp.lt.s32.totalorder %s2425_s27, %s1927_s13 }
  0xb2   : > { %1587 = vmatpush3.bf16.msra.mxu0 %v1586_v14  ;;  %1600 = vmatprep.subr.bf16.mxu1 %v2009_v0 }
  0xb3   : > { %1596 = vmatprep.subr.bf16.mxu0 %v2009_v0 }
  0xb4   : > { %1513 = vmatmul.mubr.msk.f32.vlgmr.msra.gmra.mrb[0].mxu1 %vm339_vm1, %v338_v15 }
  0xb5   : > { %1502 = vmatmul.mubr.msk.f32.vlgmr.msra.gmra.mrb[0].mxu0 %vm339_vm1, %v336_v16  ;;  %1526 = vmatprep.mubr.msk.f32.mxu1 %vm2010_vm0, %v2011_v1 }
  0xb6   : > { %1519 = vmatprep.mubr.msk.f32.mxu0 %vm2010_vm0, %v2011_v1 }
 0x187   : > { %v1514_v17 = vpop.f32.mrb[0].mxu1 }
 0x188   : > { %v485_v18 = vpop.f32.mrb[1].mxu1  ;;  %v2347_v20 = vpop.f32.mrb[0].mxu0 }
 0x189   : > { %v2349_v21 = vpack.i.bf16 %v1514_v17, %v485_v18  ;;  %v1597_v22 = vpack.c.bf16 %v1514_v17, %v485_v18  ;;  %v1503_v23 = vpop.f32.mrb[1].mxu0 }
 0x18b   : > { %1733 = vrot.lane.b32.xlu1 %v2349_v21, %s2012_s24  ;;  %1599 = vmatpush3.bf16.xpose.msk.msra.mxu0 %vm2343_vm3, %v1597_v22 }
 0x18c   : > { %1610 = vmatprep.subr.bf16.mxu0 %v2009_v0 }
 0x18f   : > { %666 = vrot.lane.b32.xlu1 %v2347_v20, %s2012_s24  ;;  %s2423_s24 = scalar_lea.hbm %s2473_s5, %s1449_s6 }
 0x192   : > { %1520 = vmatmul.mubr.msk.f32.vlgmr.msra.gmra.mrb[2].mxu0 %vm494_vm2, %v2347_v20 }
 0x193   : > { %1738 = vrot.lane.b32.xlu1 %v2349_v21, %s2013_s28  ;;  %1547 = vmatprep.mubr.msk.f32.mxu0 %vm2010_vm0, %v2011_v1 }
 0x197   : > { %844 = vrot.lane.b32.xlu1 %v2347_v20, %s2013_s28  ;;  %s1276_s28 = scalar_lea.sflag [#allocation5], %s2297_s9 }
 0x19b   : > { %1743 = vrot.lane.b32.xlu1 %v2349_v21, %s2014_s29  ;;  %s1922_s29 = scalar_lea.vmem %s2425_s27, 128 }
 0x19c   : > { %p1923_p2 = scmp.ne.s32.totalorder %s2425_s27, %s1922_s29 }
 0x19e   : > { %p1924_p4 = pnand %p1923_p2, %p2207_p5 }
 0x1a0   : > { %p1925_p0 = pneg %p1924_p4 }
 0x1fd   : > { %v1734_v24 = vpop.permute.xlu1 %1733 }
 0x1fe   : > { %v1736_v44 = vunpack.i.h.bf16 %v1734_v24  ;;  %v1735_v45 = vunpack.i.l.bf16 %v1734_v24 }
 0x200   : > { %v1604_v47 = vpack.c.bf16 %v1736_v44, %v1735_v45  ;;  %v334_v45 = vld [vmem:[#allocation11 + $0x10] sm:$0xff] }
 0x201   : > { %v667_v25 = vpop.permute.xlu1 %666 }
 0x205   : > { %v1739_v26 = vpop.permute.xlu1 %1738 }
 0x206   : > { %v1741_v27 = vunpack.i.h.bf16 %v1739_v26  ;;  %v1740_v28 = vunpack.i.l.bf16 %v1739_v26 }
 0x208   : > { %v1611_v29 = vpack.c.bf16 %v1741_v27, %v1740_v28 }
 0x209   : > { %v845_v30 = vpop.permute.xlu1 %844 }
 0x20a   : > { %1613 = vmatpush3.bf16.xpose.msk.msra.mxu0 %vm2343_vm3, %v1611_v29 }
 0x20b   : > { %1621 = vmatprep.subr.bf16.mxu0 %v2009_v0 }
 0x20d   : > { %v1744_v48 = vpop.permute.xlu1 %1743 }
 0x20e   : > { %v1746_v49 = vunpack.i.h.bf16 %v1744_v48  ;;  %v1745_v50 = vunpack.i.l.bf16 %v1744_v48 }
 0x210   : > { %v1608_v51 = vpack.c.bf16 %v1746_v49, %v1745_v50 }
 0x211   : > { %1548 = vmatmul.mubr.msk.f32.vlgmr.msra.gmra.mrb[4].mxu0 %vm494_vm2, %v845_v30 }
 0x212   : > { %1568 = vmatprep.mubr.msk.f32.mxu0 %vm2010_vm0, %v2011_v1 }
 0x265   : > { %v570_v31 = vpop.f32.mrb[2].mxu0 }
 0x266   : > { %v1521_v32 = vpop.f32.mrb[3].mxu0  ;;  %v575_v33 = vsel %vm574_vm4, %v570_v31, -inf }
 0x267   : > { %576 = vmax.xlane.f32.xlu0 %v575_v33 }
 0x27d   : > { %1728 = vrot.lane.b32.xlu0 %v2349_v21, %s2015_s17  ;;  %s1928_s17 = scalar_lea.vmem %s1927_s13, 256 }
 0x27e   : > { %p1930_p6 = scmp.lt.s32.totalorder %s1928_s17, %s1922_s29 }
 0x280   : > { %p1931_p10 = por %p1930_p6, %p1929_p8 }
 0x282   : > { %p1932_p3 = pnand %p1931_p10, %p1925_p0 }
 0x2e4   : > { %v922_v34 = vpop.f32.mrb[4].mxu0 }
 0x2e5   : > { %v1549_v35 = vpop.f32.mrb[5].mxu0  ;;  %v926_v36 = vsel %vm574_vm4, %v922_v34, -inf }
 0x2e6   : > { %927 = vmax.xlane.f32.xlu0 %v926_v36 }
 0x2f4   : > { %v577_v37 = vpop.xlane.xlu0 %576 }
 0x2f5   : > { %v578_v38 = vsub.f32 %v570_v31, %v577_v37 }
 0x2f7   : > { %v579_v39 = vmul.f32 1.442695, %v578_v38 }
 0x2f8   : > { %v1729_v40 = vpop.permute.xlu0 %1728 }
 0x2f9   : > { %1762 = vpow2.f32 %v579_v39  ;;  %v1731_v41 = vunpack.i.h.bf16 %v1729_v40  ;;  %v1730_v42 = vunpack.i.l.bf16 %v1729_v40 }
 0x2fb   : > { %v1601_v43 = vpack.c.bf16 %v1731_v41, %v1730_v42 }
 0x2fc   : > { %1748 = vrot.lane.b32.xlu0 %v2349_v21, %s2016_s15 }
 0x2fd   : > { %1602 = vmatpush3.bf16.msra.mxu1 %v1601_v43  ;;  %v333_v43 = vld [vmem:[#allocation11 + $0x8] sm:$0xff] }
 0x2fe   : > { %1603 = vmatprep.subr.bf16.mxu1 %v2009_v0 }
 0x300   : > { %1758 = vrot.lane.b32.xlu0 %v2349_v21, %s2017_s8 }
 0x303   : > { %v2375_v46 = vpop.eup %1762 }
 0x304   : > { %1527 = vmatmul.mubr.msk.f32.vlgmr.msra.gmra.mrb[2].mxu1 %vm574_vm4, %v2375_v46  ;;  %v581_v26 = vsel %vm574_vm4, %v2375_v46, 0.0  ;;  %v335_v46 = vld [vmem:[#allocation11 + $0x18] sm:$0xff] }
 0x305   : > { %1533 = vmatprep.mubr.msk.f32.mxu1 %vm2010_vm0, %v2011_v1 }
 0x306   : > { %1606 = vmatpush3.bf16.xpose.msk.msra.mxu1 %vm2343_vm3, %v1604_v47  ;;  %v1628_v47 = vpack.c.bf16 %v335_v46, %v334_v45 }
 0x307   : > { %1607 = vmatprep.subr.bf16.mxu1 %v2009_v0 }
 0x30d   : > { %1534 = vmatmul.mubr.msk.f32.vlgmr.msra.gmra.mrb[4].mxu1 %vm494_vm2, %v667_v25 }
 0x30e   : > { %1609 = vmatpush3.bf16.msra.mxu1 %v1608_v51  ;;  %1540 = vmatprep.mubr.msk.f32.mxu1 %vm2010_vm0, %v2011_v1 }
 0x30f   : > { %1614 = vmatprep.subr.bf16.mxu1 %v2009_v0 }
 0x373   : > { %v928_v52 = vpop.xlane.xlu0 %927 }
 0x374   : > { %v929_v53 = vsub.f32 %v922_v34, %v928_v52 }
 0x376   : > { %v930_v5 = vmul.f32 1.442695, %v929_v53 }
 0x377   : > { %v1749_v54 = vpop.permute.xlu0 %1748 }
 0x378   : > { %v1751_v6 = vunpack.i.h.bf16 %v1749_v54  ;;  %v1750_v7 = vunpack.i.l.bf16 %v1749_v54 }
 0x37a   : > { %v1615_v9 = vpack.c.bf16 %v1751_v6, %v1750_v7 }
 0x37b   : > { %v1759_v55 = vpop.permute.xlu0 %1758 }
 0x37c   : > { %v1761_v56 = vunpack.i.h.bf16 %v1759_v55  ;;  %v1760_v57 = vunpack.i.l.bf16 %v1759_v55 }
 0x37e   : > { %v1622_v58 = vpack.c.bf16 %v1761_v56, %v1760_v57 }
 0x380   : > { %1623 = vmatpush3.bf16.msra.mxu0 %v1622_v58 }
 0x381   : > { %1624 = vmatprep.subr.bf16.mxu0 %v2009_v0 }
 0x3d7   : > { %v2389_v59 = vpop.f32.mrb[2].mxu1 }
 0x3d8   : > { %v1528_v60 = vpop.f32.mrb[3].mxu1 }
 0x3e0   : > { %v744_v61 = vpop.f32.mrb[4].mxu1 }
 0x3e1   : > { %v1535_v62 = vpop.f32.mrb[5].mxu1  ;;  %v748_v63 = vsel %vm574_vm4, %v744_v61, -inf }
 0x3e2   : > { %749 = vmax.xlane.f32.xlu1 %v748_v63 }
 0x3f3   : > { %1753 = vrot.lane.b32.xlu1 %v2349_v21, %s2018_s23 }
 0x3f7   : > { %1022 = vrot.lane.b32.xlu1 %v2347_v20, %s2018_s23 }
 0x46f   : > { %v750_v2 = vpop.xlane.xlu1 %749 }
 0x470   : > { %v751_v3 = vsub.f32 %v744_v61, %v750_v2 }
 0x472   : > { %v752_v4 = vmul.f32 1.442695, %v751_v3 }
 0x473   : > { %v1754_v11 = vpop.permute.xlu1 %1753 }
 0x474   : > { %1764 = vpow2.f32 %v752_v4  ;;  %v1756_v13 = vunpack.i.h.bf16 %v1754_v11  ;;  %v1755_v14 = vunpack.i.l.bf16 %v1754_v11 }
 0x475   : > { %1766 = vpow2.f32 %v930_v5 }
 0x476   : > { %v1618_v15 = vpack.c.bf16 %v1756_v13, %v1755_v14 }
 0x477   : > { %v1023_v16 = vpop.permute.xlu1 %1022 }
 0x47e   : > { %v1765_v8 = vpop.eup %1764 }
 0x47f   : > { %1541 = vmatmul.mubr.msk.f32.vlgmr.msra.gmra.mrb[6].mxu1 %vm574_vm4, %v1765_v8  ;;  %v754_v10 = vsel %vm574_vm4, %v1765_v8, 0.0  ;;  %v1767_v12 = vpop.eup %1766 }
 0x480   : > { %1616 = vmatpush3.bf16.msra.mxu1 %v1615_v9  ;;  %755 = vadd.xlane.f32.xlu0 %v754_v10  ;;  %v932_v25 = vsel %vm574_vm4, %v1767_v12, 0.0 }
 0x481   : > { %1554 = vmatprep.mubr.msk.f32.mxu1 %vm2010_vm0, %v2011_v1  ;;  %1617 = vmatprep.subr.bf16.mxu1 %v2009_v0 }
 0x483   : > { %1555 = vmatmul.mubr.msk.f32.vlgmr.msra.gmra.mrb[8].mxu1 %vm574_vm4, %v1767_v12 }
 0x484   : > { %1561 = vmatprep.mubr.msk.f32.mxu1 %vm2010_vm0, %v2011_v1 }
 0x489   : > { %1620 = vmatpush3.bf16.xpose.msk.msra.mxu1 %vm2343_vm3, %v1618_v15 }
 0x490   : > { %1562 = vmatmul.mubr.msk.f32.vlgmr.msra.gmra.mrb[10].mxu1 %vm494_vm2, %v1023_v16 }
 0x50d   : > { %v756_v37 = vpop.xlane.xlu0 %755 }
 0x552   : > { %v832_v17 = vpop.f32.mrb[6].mxu1 }
 0x553   : > { %v1542_v18 = vpop.f32.mrb[7].mxu1 }
 0x556   : > { %v1010_v20 = vpop.f32.mrb[8].mxu1 }
 0x557   : > { %v1556_v21 = vpop.f32.mrb[9].mxu1 }
 0x563   : > { %v1100_v22 = vpop.f32.mrb[10].mxu1 }
 0x564   : > { %v1563_v23 = vpop.f32.mrb[11].mxu1  ;;  %v1104_v24 = vsel %vm574_vm4, %v1100_v22, -inf }
 0x565   : > { %1105 = vmax.xlane.f32.xlu1 %v1104_v24 }
 0x569   : > { %933 = vadd.xlane.f32.xlu1 %v932_v25 }
 0x56d   : > { %582 = vadd.xlane.f32.xlu1 %v581_v26 }
 0x5f2   : > { %v1106_v19 = vpop.xlane.xlu1 %1105 }
 0x5f3   : > { %v1107_v27 = vsub.f32 %v1100_v22, %v1106_v19 }
 0x5f5   : > { %v1108_v28 = vmul.f32 1.442695, %v1107_v27 }
 0x5f6   : > { %v934_v29 = vpop.xlane.xlu1 %933 }
 0x5f7   : > { %1768 = vpow2.f32 %v1108_v28 }
 0x5f8   : > { %1770 = vrcp.f32 %v934_v29 }
 0x5fa   : > { %v583_v30 = vpop.xlane.xlu1 %582 }
 0x5fb   : > { %1772 = vrcp.f32 %v583_v30 }
 0x5fc   : > { %1774 = vrcp.f32 %v756_v37 }
 0x601   : > { %v1769_v31 = vpop.eup %1768 }
 0x602   : > { %v1771_v32 = vpop.eup %1770  ;;  %1569 = vmatmul.mubr.msk.f32.vlgmr.msra.gmra.mrb[6].mxu0 %vm574_vm4, %v1769_v31  ;;  %v1110_v33 = vsel %vm574_vm4, %v1769_v31, 0.0 }
 0x603   : > { %1111 = vadd.xlane.f32.xlu0 %v1110_v33  ;;  %v1015_v34 = vmul.f32 %v1771_v32, %v1010_v20  ;;  %1579 = vmatprep.mubr.msk.f32.mxu0 %vm2010_vm0, %v2011_v1  ;;  %v332_v1 = vld [vmem:[#allocation11] sm:$0xff] }
 0x604   : > { %v1625_v44 = vpack.c.bf16 %v333_v43, %v332_v1 }
 0x605   : > { %v1773_v35 = vpop.eup %1772  ;;  %1017 = vrot.lane.b32.xlu1 %v1015_v34, %s2019_s0 }
 0x606   : > { %v664_v36 = vmul.f32 %v1773_v35, %v2389_v59  ;;  %v1775_v38 = vpop.eup %1774  ;;  %1626 = vmatpush3.bf16.msra.mxu0 %v1625_v44 }
 0x607   : > { %v837_v39 = vmul.f32 %v1775_v38, %v832_v17  ;;  %1627 = vmatprep.subr.bf16.mxu0 %v2009_v0 }
 0x608   : > { %665 = vst.msk [vmem:[#allocation2] sm:$0xff] %vm494_vm2, %v664_v36 }
 0x60a   : > { %1629 = vmatpush3.bf16.msra.mxu0 %v1628_v47 }
 0x619   : > { %839 = vrot.lane.b32.xlu0 %v837_v39, %s2020_s10 }
 0x677   : > { %v1018_v42 = vpop.permute.xlu1 %1017 }
 0x690   : > { %v1112_v40 = vpop.xlane.xlu0 %1111 }
 0x691   : > { %1776 = vrcp.f32 %v1112_v40 }
 0x694   : > { %v840_v41 = vpop.permute.xlu0 %839 }
 0x695   : > { %843 = vst.msk [vmem:[#allocation2] sm:$0xff] %vm842_vm5, %v840_v41 }
 0x696   : > { %1021 = vst.msk [vmem:[#allocation2] sm:$0xff] %vm1020_vm6, %v1018_v42 }
 0x69b   : > { %v1777_v48 = vpop.eup %1776 }
 0x6d5   : > { %v1188_v49 = vpop.f32.mrb[6].mxu0 }
 0x6d6   : > { %v1193_v50 = vmul.f32 %v1777_v48, %v1188_v49  ;;  %v1570_v51 = vpop.f32.mrb[7].mxu0 }
 0x6d8   : > { %1195 = vrot.lane.b32.xlu1 %v1193_v50, %s2021_s16 }
 0x74a   : > { %v1196_v52 = vpop.permute.xlu1 %1195 }
 0x74b   : > { %1199 = vst.msk [vmem:[#allocation2] sm:$0xff] %vm1198_vm7, %v1196_v52 }
 0x752   : > { %v1200_v53 = vld [vmem:[#allocation2] sm:$0xff] }
 0x753   : > { %1580 = vmatmul.mubr.msk.f32.vlgmr.msra.gmra.mrb[8].mxu0 %vm339_vm1, %v1200_v53 }
 0x826   : > { %v1270_v0 = vpop.f32.mrb[8].mxu0 }
 0x827   : > { %1274 = vst.msk [vmem:[%s322_s26] sm:$0xff] %vm339_vm1, %v1270_v0  ;;  %v1581_v54 = vpop.f32.mrb[9].mxu0 }
 0x828   : > { %1935 = shalt.err (!%p1932_p3)
}
 0x829   : > { %s1936_s9 = scalar_lea.hbm %s2423_s24, 128  ;;  %s1940_s23 = scalar_lea.hbm %s2473_s5, 256 }
 0x82a   : > { %p1937_p9 = scmp.ne.s32.totalorder %s2423_s24, %s1936_s9  ;;  %p1941_p7 = scmp.lt.u32.totalorder %s2423_s24, %s2473_s5 }
 0x82b   : > { %p1942_p12 = scmp.lt.u32.totalorder %s1940_s23, %s1936_s9  ;;  %p1944_p2 = scmp.lt.u32.totalorder %s1936_s9, %s2423_s24 }
 0x82c   : > { %p1938_p13 = pnand %p1937_p9, %p2207_p5 }
 0x82d   : > { %p1943_p1 = por %p1942_p12, %p1941_p7 }
 0x82e   : > { %p1939_p11 = pneg %p1938_p13 }
 0x82f   : > { %p1945_p4 = por %p1944_p2, %p1943_p1 }
 0x831   : > { %p1946_p0 = pnand %p1945_p4, %p1939_p11 }
 0x833   : > { %1949 = shalt.err (!%p1946_p0)
}
 0x834   : > { %1646 = dma.vmem_to_hbm [thread:$0]  (%p2207_p5), %s2425_s27, 128, %s2423_s24, %s1276_s28  }
 0x835 PF: > { %s1301_s16 = sand.u32 1, %s1988_s18   ;;  %p2499_p8 = scmp.ne.s32.totalorder %s2481_s25, 0 }
 0x836   : > { %p2500_p6 = scmp.ge.s32.totalorder %s2000_s21, 2  ;;  %s1302_s6 = scalar_lea.sflag [#allocation5], %s1301_s16 }
 0x838   : > { %p1666_p10 = pnand %p2500_p6, %p2499_p8 }
 0x83a   : > { %1983 = dma.done.wait (!%p1666_p10), %s1302_s6, 128  }
 0x83b   : > { %1985 = vsyncadd (!%p1666_p10), %s1302_s6, 4294967168  ;;  %p22_p3 = scmp.ge.s32.totalorder %s2193_s14, 4   ;;  %s2501_s18 = smov %s1992_s19 }
 0x83c   : > { %s2502_s19 = smov %s1996_s20  ;;  %s2503_s20 = smov %s2203_s30 }
 0x83d   : > { %s2504_s21 = smov %s2193_s14  ;;  %24 = sbr.rel (!%p22_p3) target bundleno = 10 (0xa), region = 110 }
 0x844   :  { %1307 = vsyncpa [#allocation4], 1 }
 0x845   :  { %1309 = vsyncpa [#allocation4 + $0x1], 1 }
 0x846   :  { %1310 = vsyncpa [#allocation7], 1 }
 0x847   :  { %1312 = vsyncpa [#allocation7 + $0x1], 1 }
 0x848   :  { %1313 = vsyncpa [#allocation10], 1 }
 0x849   :  { %1314 = vsyncpa [#allocation5], 1 }
 0x84a   :  { %1316 = vsyncpa [#allocation5 + $0x1], 1 }

// kernel: tpu_custom_call.1
= control target key start
LH: loop header
LB: loop body
LE: loop exit
PB: predicated region body
PF: predicated region fallthrough
CT: control target
= control target key end

     0   :  { %s2468_s0 = inlined_call_operand.hbm [shape: f32[16,32], index: 0, kind: input, shape index: {}]   ;;  %s2469_s1 = inlined_call_operand.hbm [shape: f32[32,32], index: 1, kind: input, shape index: {}]   ;;  %s2470_s2 = inlined_call_operand.hbm [shape: f32[32,32], index: 2, kind: input, shape index: {}]   ;;  %s2471_s3 = inlined_call_operand.hbm [shape: f32[32,64], index: 3, kind: input, shape index: {}]   ;;  %s2472_s4 = inlined_call_operand.hbm [shape: f32[32,32], index: 4, kind: input, shape index: {}]   ;;  %s2473_s5 = inlined_call_operand.hbm [shape: f32[16,32], index: 5, kind: output, shape index: {}]  }
   0x1   :  { %2479 = sst [smem:[#allocation18_spill]] %s2468_s0 }
   0x2   :  { %10 = vsyncpa [#allocation4], 0 }
   0x3   :  { %12 = vsyncpa [#allocation4 + $0x1], 0 }
   0x4   :  { %13 = vsyncpa [#allocation7], 0 }
   0x5   :  { %15 = vsyncpa [#allocation7 + $0x1], 0 }
   0x6   :  { %16 = vsyncpa [#allocation10], 0 }
   0x7   :  { %17 = vsyncpa [#allocation5], 0 }
   0x8   :  { %19 = vsyncpa [#allocation5 + $0x1], 0  ;;  %s2053_s18 = smov 0   ;;  %s2055_s19 = smov 0  }
   0x9   :  { %s2057_s20 = smov 0   ;;  %s2059_s21 = smov 0  }
   0xa LB: > { %s2074_s22 = sadd.s32 4294967295, %s2000_s21   ;;  %s1410_s23 = sadd.s32 4294967294, %s2000_s21   ;;  %s2000_s21 = sphi %s2059_s21, %s2504_s21   ;;  %s1996_s20 = sphi %s2057_s20, %s2503_s20   ;;  %s1992_s19 = sphi %s2055_s19, %s2502_s19   ;;  %s1988_s18 = sphi %s2053_s18, %s2501_s18  }
   0xb   : > { %p45_p0 = scmp.ne.s32.totalorder %s1992_s19, %s1988_s18  ;;  %p2474_p1 = scmp.eq.s32.totalorder %s2074_s22, 0 }
   0xc   : > { %p164_p3 = scmp.eq.s32.totalorder %s1410_s23, 1  ;;  %p1411_p5 = scmp.ge.s32.totalorder %s2000_s21, 1 }
   0xd   : > { %p2083_p4 = por %p2474_p1, %p45_p0  ;;  %p171_p7 = scmp.lt.s32.totalorder %s2000_s21, 3 }
   0xe   : > { %p2088_p6 = por %p164_p3, %p45_p0  ;;  %s2002_s27 = smov [#allocation8]  }
   0xf   : > { %s2480_s24 = scalar_select %p2083_p4, 1, 0 }
  0x10   : > { %s2481_s25 = scalar_select %p2088_p6, 1, 0 }
  0x11   : > { %p2093_p8 = pnand %p1411_p5, %p171_p7  ;;  %s183_s28 = sshll.u32 %s2002_s27, 4  ;;  %s2097_s28 = int_to_ptr.vmem [resolvable:$true] %s183_s28 }
  0x12   : > { %s2003_s30 = smov [#allocation9]   ;;  %s2004_s7 = smov [#allocation11]  }
  0x13   : > { %s2482_s26 = scalar_select %p2093_p8, 1, 0 }
  0x14   : > { %p1648_p9 = pneg %p2093_p8  ;;  %s196_s6 = sshll.u32 %s2003_s30, 4  ;;  %s2108_s6 = int_to_ptr.vmem [resolvable:$true] %s196_s6 }
  0x15   : > { %s2110_s8 = sshll.u32 %s2004_s7, 4  ;;  %s1778_s11 = scalar_lea.hbm %s2470_s2, 512  ;;  %s210_s8 = int_to_ptr.vmem [resolvable:$true] %s2110_s8 }
  0x16   : > { %p2104_p11 = pnand %p1648_p9, %p2474_p1  ;;  %p1779_p12 = scmp.ne.s32.totalorder %s2470_s2, %s1778_s11 }
  0x17   : > { %p1785_p5 = scmp.lt.u32.totalorder %s1778_s11, %s2470_s2 }
  0x18   : > { %p2120_p13 = pneg %p2104_p11 }
  0x1a   : > { %p1781_p0 = pnand %p2120_p13, %p1779_p12 }
  0x1c   : > { %p1782_p3 = pneg %p1781_p0 }
  0x1e   : > { %p1787_p7 = pnand %p1785_p5, %p1782_p3 }
  0x20   : > { %1790 = shalt.err (!%p1787_p7)
}
  0x21   : > { %s1791_s17 = scalar_lea.vmem %s2097_s28, 512  ;;  %p1799_p2 = scmp.lt.s32.totalorder %s2097_s28, %s2097_s28 }
  0x22   : > { %p1792_p9 = scmp.ne.s32.totalorder %s2097_s28, %s1791_s17  ;;  %p1800_p6 = scmp.lt.s32.totalorder %s1791_s17, %s1791_s17 }
  0x24   : > { %p1794_p10 = pnand %p1792_p9, %p2120_p13  ;;  %p1801_p12 = por %p1800_p6, %p1799_p2 }
  0x26   : > { %p1795_p1 = pneg %p1794_p10 }
  0x28   : > { %p1802_p0 = pnand %p1801_p12, %p1795_p1 }
  0x2a   : > { %1805 = shalt.err (!%p1802_p0)
}
  0x2b   : > { %s2477_s23 = smov 128   ;;  %s2478_s27 = smov 8  }
  0x2c   : > { %1651 = dma.hbm_to_vmem [thread:$0]  (!%p2104_p11), %s2470_s2, 512, %s2097_s28, [#allocation7], %s2477_s23, %s2477_s23, %s2478_s27  }
  0x2d   : > { %s1806_s11 = scalar_lea.hbm %s2471_s3, 512 }
  0x2e   : > { %p1807_p1 = scmp.ne.s32.totalorder %s2471_s3, %s1806_s11  ;;  %p1813_p10 = scmp.lt.u32.totalorder %s1806_s11, %s2471_s3 }
  0x30   : > { %p1809_p2 = pnand %p1807_p1, %p2120_p13 }
  0x32   : > { %p1810_p6 = pneg %p1809_p2 }
  0x34   : > { %p1815_p3 = pnand %p1813_p10, %p1810_p6 }
  0x36   : > { %1818 = shalt.err (!%p1815_p3)
}
  0x37   : > { %s1819_s28 = scalar_lea.vmem %s2108_s6, 512  ;;  %p1827_p12 = scmp.lt.s32.totalorder %s2108_s6, %s2108_s6 }
  0x38   : > { %p1820_p5 = scmp.ne.s32.totalorder %s2108_s6, %s1819_s28  ;;  %p1828_p0 = scmp.lt.s32.totalorder %s1819_s28, %s1819_s28 }
  0x3a   : > { %p1822_p7 = pnand %p1820_p5, %p2120_p13  ;;  %p1829_p1 = por %p1828_p0, %p1827_p12 }
  0x3c   : > { %p1823_p9 = pneg %p1822_p7 }
  0x3e   : > { %p1830_p2 = pnand %p1829_p1, %p1823_p9 }
  0x40   : > { %1833 = shalt.err (!%p1830_p2)
}
  0x41   : > { %1654 = dma.hbm_to_vmem [thread:$0]  (!%p2104_p11), %s2471_s3, 512, %s2108_s6, [#allocation10], %s2477_s23, %s2477_s23, %s2478_s27  }
  0x42   : > { %s1834_s10 = scalar_lea.hbm %s2472_s4, 512 }
  0x43   : > { %p1835_p6 = scmp.ne.s32.totalorder %s2472_s4, %s1834_s10  ;;  %p1841_p5 = scmp.lt.u32.totalorder %s1834_s10, %s2472_s4 }
  0x45   : > { %p1837_p10 = pnand %p1835_p6, %p2120_p13 }
  0x47   : > { %p1838_p3 = pneg %p1837_p10 }
  0x49   : > { %p1843_p7 = pnand %p1841_p5, %p1838_p3 }
  0x4b   : > { %1846 = shalt.err (!%p1843_p7)
}
  0x4c   : > { %s1847_s16 = scalar_lea.vmem %s210_s8, 512  ;;  %p1855_p1 = scmp.lt.s32.totalorder %s210_s8, %s210_s8 }
  0x4d   : > { %p1848_p9 = scmp.ne.s32.totalorder %s210_s8, %s1847_s16  ;;  %p1856_p2 = scmp.lt.s32.totalorder %s1847_s16, %s1847_s16 }
  0x4f   : > { %p1850_p12 = pnand %p1848_p9, %p2120_p13  ;;  %p1857_p4 = por %p1856_p2, %p1855_p1 }
  0x51   : > { %p1851_p0 = pneg %p1850_p12 }
  0x53   : > { %p1858_p8 = pnand %p1857_p4, %p1851_p0 }
  0x55   : > { %1861 = shalt.err (!%p1858_p8)
}
  0x56   : > { %1657 = dma.hbm_to_vmem [thread:$0]  (!%p2104_p11), %s2472_s4, 512, %s210_s8, [#allocation10], %s2477_s23, %s2477_s23, %s2478_s27  }
  0x57   : > { %s2193_s14 = sadd.s32 1, %s2000_s21   ;;  %s32_s17 = sadd.s32 1, %s1996_s20 }
  0x58   : > { %s29_s29 = ssub.s32 %s2000_s21, %s2193_s14  ;;  %p39_p8 = scmp.ne.s32.totalorder %s1996_s20, %s1992_s19 }
  0x59   : > { %p30_p4 = scmp.eq.s32.totalorder %s29_s29, 0  ;;  %p40_p13 = scmp.eq.s32.totalorder %s2000_s21, 0 }
  0x5a   : > { %p1672_p6 = scmp.lt.s32.totalorder %s2000_s21, 2  ;;  %p2485_p3 = scmp.eq.s32.totalorder %s2074_s22, 1 }
  0x5b   : > { %s2203_s30 = scalar_select %p30_p4, %s1996_s20, %s32_s17  }
  0x5c   : > { %p41_p10 = por %p40_p13, %p39_p8  ;;  %p2207_p5 = por %p2485_p3, %p39_p8 }
  0x5d   : > { %s2212_s9 = sand.u32 1, %s1996_s20   ;;  %s1417_s8 = sshll.u32 %s2000_s21, 7 }
  0x5e   : > { %s1416_s10 = sshll.u32 %s2212_s9, 3  ;;  %s2487_s0 = sld [smem:[#allocation18_spill]] }
  0x5f   : > { %s227_s15 = scalar_lea.vmem [#allocation3], %s1416_s10  ;;  %p2221_p11 = pnand %p1672_p6, %p41_p10 }
  0x60   : > { %s234_s16 = sshll.u32 %s227_s15, 4  ;;  %s1418_s28 = sshll.u32 %s2212_s9, 4  ;;  %s2225_s16 = int_to_ptr.vmem [resolvable:$true] %s234_s16 }
  0x61   : > { %s224_s29 = scalar_lea.sflag [#allocation4], %s2212_s9  ;;  %p1864_p9 = pneg %p2221_p11 }
  0x64   : > { %s2219_s13 = scalar_lea.hbm %s2487_s0, %s1417_s8  ;;  %s1867_s11 = scalar_lea.hbm %s2487_s0, 256 }
  0x65   : > { %s1862_s17 = scalar_lea.hbm %s2219_s13, 128  ;;  %p1868_p1 = scmp.lt.u32.totalorder %s2219_s13, %s2487_s0 }
  0x66   : > { %p1863_p7 = scmp.ne.s32.totalorder %s2219_s13, %s1862_s17  ;;  %p1869_p2 = scmp.lt.u32.totalorder %s1867_s11, %s1862_s17 }
  0x67   : > { %p1871_p8 = scmp.lt.u32.totalorder %s1862_s17, %s2219_s13 }
  0x68   : > { %p1865_p12 = pnand %p1864_p9, %p1863_p7  ;;  %p1870_p4 = por %p1869_p2, %p1868_p1 }
  0x6a   : > { %p1866_p0 = pneg %p1865_p12  ;;  %p1872_p13 = por %p1871_p8, %p1870_p4 }
  0x6c   : > { %p1873_p6 = pnand %p1872_p13, %p1866_p0 }
  0x6e   : > { %1876 = shalt.err (!%p1873_p6)
}
  0x6f   : > { %s1877_s23 = scalar_lea.vmem %s2225_s16, 128  ;;  %s2007_s8 = smov [#allocation3]  }
  0x70   : > { %p1878_p10 = scmp.ne.s32.totalorder %s2225_s16, %s1877_s23  ;;  %s1882_s10 = sshll.u32 %s2007_s8, 4  ;;  %s1883_s10 = int_to_ptr.vmem [resolvable:$false] %s1882_s10 }
  0x71   : > { %s1884_s12 = scalar_lea.vmem %s1883_s10, 256  ;;  %p1885_p12 = scmp.lt.s32.totalorder %s2225_s16, %s1883_s10 }
  0x72   : > { %p1880_p3 = pnand %p1878_p10, %p1864_p9  ;;  %p1886_p1 = scmp.lt.s32.totalorder %s1884_s12, %s1877_s23 }
  0x74   : > { %p1881_p7 = pneg %p1880_p3  ;;  %p1887_p2 = por %p1886_p1, %p1885_p12 }
  0x76   : > { %p1888_p4 = pnand %p1887_p2, %p1881_p7 }
  0x78   : > { %1891 = shalt.err (!%p1888_p4)
}
  0x79   : > { %1661 = dma.hbm_to_vmem [thread:$0]  (!%p2221_p11), %s2219_s13, 128, %s2225_s16, %s224_s29  }
  0x7a   : > { %s245_s17 = scalar_lea.vmem [#allocation6], %s1418_s28  ;;  %s241_s15 = sand.u32 1, %s2000_s21  }
  0x7b   : > { %s252_s11 = sshll.u32 %s245_s17, 4  ;;  %s1452_s8 = sshll.u32 %s2000_s21, 8  ;;  %s2257_s11 = int_to_ptr.vmem [resolvable:$true] %s252_s11 }
  0x7c   : > { %s2263_s12 = scalar_lea.hbm %s2469_s1, %s1452_s8  ;;  %s2265_s27 = scalar_lea.sflag [#allocation7], %s241_s15 }
  0x7d   : > { %s1892_s0 = scalar_lea.hbm %s2263_s12, 256  ;;  %s1897_s16 = scalar_lea.hbm %s2469_s1, 512 }
  0x7e   : > { %p1893_p0 = scmp.ne.s32.totalorder %s2263_s12, %s1892_s0  ;;  %p1898_p6 = scmp.lt.u32.totalorder %s2263_s12, %s2469_s1 }
  0x7f   : > { %p1899_p10 = scmp.lt.u32.totalorder %s1897_s16, %s1892_s0  ;;  %p1901_p7 = scmp.lt.u32.totalorder %s1892_s0, %s2263_s12 }
  0x80   : > { %p1895_p8 = pnand %p1893_p0, %p1864_p9 }
  0x81   : > { %p1900_p3 = por %p1899_p10, %p1898_p6 }
  0x82   : > { %p1896_p13 = pneg %p1895_p8 }
  0x83   : > { %p1902_p12 = por %p1901_p7, %p1900_p3 }
  0x85   : > { %p1903_p1 = pnand %p1902_p12, %p1896_p13 }
  0x87   : > { %1906 = shalt.err (!%p1903_p1)
}
  0x88   : > { %s1907_s17 = scalar_lea.vmem %s2257_s11, 256  ;;  %s2008_s15 = smov [#allocation6]  }
  0x89   : > { %p1908_p2 = scmp.ne.s32.totalorder %s2257_s11, %s1907_s17  ;;  %s1912_s8 = sshll.u32 %s2008_s15, 4  ;;  %s1913_s8 = int_to_ptr.vmem [resolvable:$false] %s1912_s8 }
  0x8a   : > { %s1914_s23 = scalar_lea.vmem %s1913_s8, 512  ;;  %p1915_p8 = scmp.lt.s32.totalorder %s2257_s11, %s1913_s8 }
  0x8b   : > { %p1910_p4 = pnand %p1908_p2, %p1864_p9  ;;  %p1916_p6 = scmp.lt.s32.totalorder %s1914_s23, %s1907_s17 }
  0x8d   : > { %p1911_p0 = pneg %p1910_p4  ;;  %p1917_p10 = por %p1916_p6, %p1915_p8 }
  0x8f   : > { %p1918_p3 = pnand %p1917_p10, %p1911_p0 }
  0x91   : > { %1921 = shalt.err (!%p1918_p3)
}
  0x92   : > { %s2489_s0 = smov 8   ;;  %s2490_s10 = smov 128  }
  0x93   : > { %1664 = dma.hbm_to_vmem [thread:$0]  (!%p2221_p11), %s2263_s12, 256, %s2257_s11, %s2265_s27, %s2490_s10, %s2490_s10, %s2489_s0  }
  0x94   : > { %p2491_p9 = scmp.ne.s32.totalorder %s2482_s26, 0 }
  0x95   : > { %s2297_s9 = sand.u32 (!%p2491_p9), 1, %s1992_s19   ;;  %p2492_p13 = scmp.ne.s32.totalorder (!%p2491_p9), %s2480_s24, 0 }
  0x96   : > { %264 = sbr.rel (%p2491_p9) target bundleno = 2101 (0x835), region = 40  ;;  %s1422_s13 = sshll.u32 (!%p2491_p9), %s2297_s9, 3 }
  0x97   : > { %s267_s16 = scalar_lea.sflag (!%p2491_p9), [#allocation4], %s2297_s9  ;;  %s2303_s6 = scalar_lea.vmem (!%p2491_p9), [#allocation3], %s1422_s13 }
  0x9d   : > { %1967 = dma.done.wait (%p2492_p13), %s267_s16, 128  }
  0x9e   : > { %1969 = vsyncadd (%p2492_p13), %s267_s16, 4294967168  ;;  %s275_s26 = sand.u32 1, %s2074_s22   ;;  %s1423_s27 = sshll.u32 %s2297_s9, 4 }
  0x9f   : > { %s276_s11 = scalar_lea.sflag [#allocation7], %s275_s26  ;;  %s2311_s12 = scalar_lea.vmem [#allocation6], %s1423_s27 }
  0xa0   : > { %1971 = dma.done.wait (%p2492_p13), %s276_s11, 256  }
  0xa1   : > { %1973 = vsyncadd (%p2492_p13), %s276_s11, 4294967040  ;;  %p2493_p11 = scmp.eq.s32.totalorder %s2074_s22, 0 }
  0xa3   : > { %1975 = dma.done.wait (%p2493_p11), [#allocation7], 512   ;;  %p2494_p7 = pmov %p2493_p11 }
  0xa5   : > { %1977 = vsyncadd (%p2494_p7), [#allocation7], 4294966784  ;;  %p2495_p12 = pmov %p2494_p7 }
  0xa6   : > { %p2496_p1 = pmov %p2494_p7 }
  0xa7   : > { %1979 = dma.done.wait (%p2495_p12), [#allocation10], 1024  }
  0xa8   : > { %1981 = vsyncadd (%p2496_p1), [#allocation10], 4294966272  ;;  %v2009_v0 = vmov 0.0|0.0   ;;  %vm2010_vm0 = vmmov 0   ;;  %v2011_v1 = vmov 0.0   ;;  %vm339_vm1 = vcmask 261120  }
  0xa9   : > { %1582 = vmatprep.subr.bf16.mxu0 %v2009_v0  ;;  %1501 = vmatprep.mubr.msk.f32.mxu0 %vm2010_vm0, %v2011_v1  ;;  %v328_v2 = vld [vmem:[#allocation9] sm:$0xff]  ;;  %v329_v3 = vld [vmem:[#allocation9 + $0x8] sm:$0xff]  ;;  %v330_v4 = vld [vmem:[#allocation9 + $0x10] sm:$0xff]  ;;  %vm494_vm2 = vcmask 64512   ;;  %s2012_s24 = smov 120   ;;  %s2013_s28 = smov 112  }
  0xaa   : > { %v1588_v5 = vpack.c.bf16 %v329_v3, %v328_v2  ;;  %v331_v6 = vld [vmem:[#allocation9 + $0x18] sm:$0xff]  ;;  %v337_v7 = vld [vmem:[%s2311_s12] sm:$0xff]  ;;  %v325_v10 = vld [vmem:[#allocation8 + $0x8] sm:$0xff]  ;;  %s2014_s29 = smov 88   ;;  %vm574_vm4 = vcmask 130048   ;;  %s2015_s17 = smov 96  }
  0xab   : > { %v324_v8 = vld [vmem:[#allocation8] sm:$0xff]  ;;  %v1592_v9 = vpack.c.bf16 %v331_v6, %v330_v4  ;;  %1512 = vmatprep.mubr.msk.f32.mxu1 %vm339_vm1, %v337_v7  ;;  %v326_v11 = vld [vmem:[#allocation8 + $0x10] sm:$0xff]  ;;  %v327_v13 = vld [vmem:[#allocation8 + $0x18] sm:$0xff]  ;;  %s2016_s15 = smov 80   ;;  %s2017_s8 = smov 72   ;;  %vm842_vm5 = vcmask 130112  }
  0xac   : > { %1589 = vmatprep.subr.bf16.mxu1 %v1588_v5  ;;  %v1583_v12 = vpack.c.bf16 %v325_v10, %v324_v8  ;;  %v1586_v14 = vpack.c.bf16 %v327_v13, %v326_v11  ;;  %v338_v15 = vld [vmem:[%s2311_s12 + $0x8] sm:$0xff]  ;;  %vm2343_vm3 = vmpackc.low %vm494_vm2, %vm494_vm2  ;;  %s2018_s23 = smov 104   ;;  %s2019_s0 = smov 16   ;;  %vm1020_vm6 = vcmask 195712   ;;  %vm1198_vm7 = vcmask 261312  }
  0xad   : > { %1591 = vmatpush3.bf16.msra.mxu1 %v1588_v5  ;;  %v336_v16 = vld [vmem:[%s2303_s6] sm:$0xff]  ;;  %s2020_s10 = smov 8   ;;  %s2021_s16 = smov 24  }
  0xae   : > { %1593 = vmatprep.subr.bf16.mxu1 %v1592_v9  ;;  %1584 = vmatpush3.bf16.msra.mxu0 %v1583_v12  ;;  %s1449_s6 = sshll.u32 %s2074_s22, 7  ;;  %s322_s26 = scalar_lea.vmem [#allocation12], %s1422_s13 }
  0xaf   : > { %1585 = vmatprep.subr.bf16.mxu0 %v2009_v0  ;;  %s1289_s27 = sshll.u32 %s322_s26, 4  ;;  %s2022_s22 = smov [#allocation12]   ;;  %s2425_s27 = int_to_ptr.vmem [resolvable:$true] %s1289_s27 }
  0xb0   : > { %s1926_s13 = sshll.u32 %s2022_s22, 4  ;;  %s1927_s13 = int_to_ptr.vmem [resolvable:$false] %s1926_s13 }
  0xb1   : > { %1595 = vmatpush3.bf16.msra.mxu1 %v1592_v9  ;;  %p1929_p8 = scmp.lt.s32.totalorder %s2425_s27, %s1927_s13 }
  0xb2   : > { %1587 = vmatpush3.bf16.msra.mxu0 %v1586_v14  ;;  %1600 = vmatprep.subr.bf16.mxu1 %v2009_v0 }
  0xb3   : > { %1596 = vmatprep.subr.bf16.mxu0 %v2009_v0 }
  0xb4   : > { %1513 = vmatmul.mubr.msk.f32.vlgmr.msra.gmra.mrb[0].mxu1 %vm339_vm1, %v338_v15 }
  0xb5   : > { %1502 = vmatmul.mubr.msk.f32.vlgmr.msra.gmra.mrb[0].mxu0 %vm339_vm1, %v336_v16  ;;  %1526 = vmatprep.mubr.msk.f32.mxu1 %vm2010_vm0, %v2011_v1 }
  0xb6   : > { %1519 = vmatprep.mubr.msk.f32.mxu0 %vm2010_vm0, %v2011_v1 }
 0x187   : > { %v1514_v17 = vpop.f32.mrb[0].mxu1 }
 0x188   : > { %v485_v18 = vpop.f32.mrb[1].mxu1  ;;  %v2347_v20 = vpop.f32.mrb[0].mxu0 }
 0x189   : > { %v2349_v21 = vpack.i.bf16 %v1514_v17, %v485_v18  ;;  %v1597_v22 = vpack.c.bf16 %v1514_v17, %v485_v18  ;;  %v1503_v23 = vpop.f32.mrb[1].mxu0 }
 0x18b   : > { %1733 = vrot.lane.b32.xlu1 %v2349_v21, %s2012_s24  ;;  %1599 = vmatpush3.bf16.xpose.msk.msra.mxu0 %vm2343_vm3, %v1597_v22 }
 0x18c   : > { %1610 = vmatprep.subr.bf16.mxu0 %v2009_v0 }
 0x18f   : > { %666 = vrot.lane.b32.xlu1 %v2347_v20, %s2012_s24  ;;  %s2423_s24 = scalar_lea.hbm %s2473_s5, %s1449_s6 }
 0x192   : > { %1520 = vmatmul.mubr.msk.f32.vlgmr.msra.gmra.mrb[2].mxu0 %vm494_vm2, %v2347_v20 }
 0x193   : > { %1738 = vrot.lane.b32.xlu1 %v2349_v21, %s2013_s28  ;;  %1547 = vmatprep.mubr.msk.f32.mxu0 %vm2010_vm0, %v2011_v1 }
 0x197   : > { %844 = vrot.lane.b32.xlu1 %v2347_v20, %s2013_s28  ;;  %s1276_s28 = scalar_lea.sflag [#allocation5], %s2297_s9 }
 0x19b   : > { %1743 = vrot.lane.b32.xlu1 %v2349_v21, %s2014_s29  ;;  %s1922_s29 = scalar_lea.vmem %s2425_s27, 128 }
 0x19c   : > { %p1923_p2 = scmp.ne.s32.totalorder %s2425_s27, %s1922_s29 }
 0x19e   : > { %p1924_p4 = pnand %p1923_p2, %p2207_p5 }
 0x1a0   : > { %p1925_p0 = pneg %p1924_p4 }
 0x1fd   : > { %v1734_v24 = vpop.permute.xlu1 %1733 }
 0x1fe   : > { %v1736_v44 = vunpack.i.h.bf16 %v1734_v24  ;;  %v1735_v45 = vunpack.i.l.bf16 %v1734_v24 }
 0x200   : > { %v1604_v47 = vpack.c.bf16 %v1736_v44, %v1735_v45  ;;  %v334_v45 = vld [vmem:[#allocation11 + $0x10] sm:$0xff] }
 0x201   : > { %v667_v25 = vpop.permute.xlu1 %666 }
 0x205   : > { %v1739_v26 = vpop.permute.xlu1 %1738 }
 0x206   : > { %v1741_v27 = vunpack.i.h.bf16 %v1739_v26  ;;  %v1740_v28 = vunpack.i.l.bf16 %v1739_v26 }
 0x208   : > { %v1611_v29 = vpack.c.bf16 %v1741_v27, %v1740_v28 }
 0x209   : > { %v845_v30 = vpop.permute.xlu1 %844 }
 0x20a   : > { %1613 = vmatpush3.bf16.xpose.msk.msra.mxu0 %vm2343_vm3, %v1611_v29 }
 0x20b   : > { %1621 = vmatprep.subr.bf16.mxu0 %v2009_v0 }
 0x20d   : > { %v1744_v48 = vpop.permute.xlu1 %1743 }
 0x20e   : > { %v1746_v49 = vunpack.i.h.bf16 %v1744_v48  ;;  %v1745_v50 = vunpack.i.l.bf16 %v1744_v48 }
 0x210   : > { %v1608_v51 = vpack.c.bf16 %v1746_v49, %v1745_v50 }
 0x211   : > { %1548 = vmatmul.mubr.msk.f32.vlgmr.msra.gmra.mrb[4].mxu0 %vm494_vm2, %v845_v30 }
 0x212   : > { %1568 = vmatprep.mubr.msk.f32.mxu0 %vm2010_vm0, %v2011_v1 }
 0x265   : > { %v570_v31 = vpop.f32.mrb[2].mxu0 }
 0x266   : > { %v1521_v32 = vpop.f32.mrb[3].mxu0  ;;  %v575_v33 = vsel %vm574_vm4, %v570_v31, -inf }
 0x267   : > { %576 = vmax.xlane.f32.xlu0 %v575_v33 }
 0x27d   : > { %1728 = vrot.lane.b32.xlu0 %v2349_v21, %s2015_s17  ;;  %s1928_s17 = scalar_lea.vmem %s1927_s13, 256 }
 0x27e   : > { %p1930_p6 = scmp.lt.s32.totalorder %s1928_s17, %s1922_s29 }
 0x280   : > { %p1931_p10 = por %p1930_p6, %p1929_p8 }
 0x282   : > { %p1932_p3 = pnand %p1931_p10, %p1925_p0 }
 0x2e4   : > { %v922_v34 = vpop.f32.mrb[4].mxu0 }
 0x2e5   : > { %v1549_v35 = vpop.f32.mrb[5].mxu0  ;;  %v926_v36 = vsel %vm574_vm4, %v922_v34, -inf }
 0x2e6   : > { %927 = vmax.xlane.f32.xlu0 %v926_v36 }
 0x2f4   : > { %v577_v37 = vpop.xlane.xlu0 %576 }
 0x2f5   : > { %v578_v38 = vsub.f32 %v570_v31, %v577_v37 }
 0x2f7   : > { %v579_v39 = vmul.f32 1.442695, %v578_v38 }
 0x2f8   : > { %v1729_v40 = vpop.permute.xlu0 %1728 }
 0x2f9   : > { %1762 = vpow2.f32 %v579_v39  ;;  %v1731_v41 = vunpack.i.h.bf16 %v1729_v40  ;;  %v1730_v42 = vunpack.i.l.bf16 %v1729_v40 }
 0x2fb   : > { %v1601_v43 = vpack.c.bf16 %v1731_v41, %v1730_v42 }
 0x2fc   : > { %1748 = vrot.lane.b32.xlu0 %v2349_v21, %s2016_s15 }
 0x2fd   : > { %1602 = vmatpush3.bf16.msra.mxu1 %v1601_v43  ;;  %v333_v43 = vld [vmem:[#allocation11 + $0x8] sm:$0xff] }
 0x2fe   : > { %1603 = vmatprep.subr.bf16.mxu1 %v2009_v0 }
 0x300   : > { %1758 = vrot.lane.b32.xlu0 %v2349_v21, %s2017_s8 }
 0x303   : > { %v2375_v46 = vpop.eup %1762 }
 0x304   : > { %1527 = vmatmul.mubr.msk.f32.vlgmr.msra.gmra.mrb[2].mxu1 %vm574_vm4, %v2375_v46  ;;  %v581_v26 = vsel %vm574_vm4, %v2375_v46, 0.0  ;;  %v335_v46 = vld [vmem:[#allocation11 + $0x18] sm:$0xff] }
 0x305   : > { %1533 = vmatprep.mubr.msk.f32.mxu1 %vm2010_vm0, %v2011_v1 }
 0x306   : > { %1606 = vmatpush3.bf16.xpose.msk.msra.mxu1 %vm2343_vm3, %v1604_v47  ;;  %v1628_v47 = vpack.c.bf16 %v335_v46, %v334_v45 }
 0x307   : > { %1607 = vmatprep.subr.bf16.mxu1 %v2009_v0 }
 0x30d   : > { %1534 = vmatmul.mubr.msk.f32.vlgmr.msra.gmra.mrb[4].mxu1 %vm494_vm2, %v667_v25 }
 0x30e   : > { %1609 = vmatpush3.bf16.msra.mxu1 %v1608_v51  ;;  %1540 = vmatprep.mubr.msk.f32.mxu1 %vm2010_vm0, %v2011_v1 }
 0x30f   : > { %1614 = vmatprep.subr.bf16.mxu1 %v2009_v0 }
 0x373   : > { %v928_v52 = vpop.xlane.xlu0 %927 }
 0x374   : > { %v929_v53 = vsub.f32 %v922_v34, %v928_v52 }
 0x376   : > { %v930_v5 = vmul.f32 1.442695, %v929_v53 }
 0x377   : > { %v1749_v54 = vpop.permute.xlu0 %1748 }
 0x378   : > { %v1751_v6 = vunpack.i.h.bf16 %v1749_v54  ;;  %v1750_v7 = vunpack.i.l.bf16 %v1749_v54 }
 0x37a   : > { %v1615_v9 = vpack.c.bf16 %v1751_v6, %v1750_v7 }
 0x37b   : > { %v1759_v55 = vpop.permute.xlu0 %1758 }
 0x37c   : > { %v1761_v56 = vunpack.i.h.bf16 %v1759_v55  ;;  %v1760_v57 = vunpack.i.l.bf16 %v1759_v55 }
 0x37e   : > { %v1622_v58 = vpack.c.bf16 %v1761_v56, %v1760_v57 }
 0x380   : > { %1623 = vmatpush3.bf16.msra.mxu0 %v1622_v58 }
 0x381   : > { %1624 = vmatprep.subr.bf16.mxu0 %v2009_v0 }
 0x3d7   : > { %v2389_v59 = vpop.f32.mrb[2].mxu1 }
 0x3d8   : > { %v1528_v60 = vpop.f32.mrb[3].mxu1 }
 0x3e0   : > { %v744_v61 = vpop.f32.mrb[4].mxu1 }
 0x3e1   : > { %v1535_v62 = vpop.f32.mrb[5].mxu1  ;;  %v748_v63 = vsel %vm574_vm4, %v744_v61, -inf }
 0x3e2   : > { %749 = vmax.xlane.f32.xlu1 %v748_v63 }
 0x3f3   : > { %1753 = vrot.lane.b32.xlu1 %v2349_v21, %s2018_s23 }
 0x3f7   : > { %1022 = vrot.lane.b32.xlu1 %v2347_v20, %s2018_s23 }
 0x46f   : > { %v750_v2 = vpop.xlane.xlu1 %749 }
 0x470   : > { %v751_v3 = vsub.f32 %v744_v61, %v750_v2 }
 0x472   : > { %v752_v4 = vmul.f32 1.442695, %v751_v3 }
 0x473   : > { %v1754_v11 = vpop.permute.xlu1 %1753 }
 0x474   : > { %1764 = vpow2.f32 %v752_v4  ;;  %v1756_v13 = vunpack.i.h.bf16 %v1754_v11  ;;  %v1755_v14 = vunpack.i.l.bf16 %v1754_v11 }
 0x475   : > { %1766 = vpow2.f32 %v930_v5 }
 0x476   : > { %v1618_v15 = vpack.c.bf16 %v1756_v13, %v1755_v14 }
 0x477   : > { %v1023_v16 = vpop.permute.xlu1 %1022 }
 0x47e   : > { %v1765_v8 = vpop.eup %1764 }
 0x47f   : > { %1541 = vmatmul.mubr.msk.f32.vlgmr.msra.gmra.mrb[6].mxu1 %vm574_vm4, %v1765_v8  ;;  %v754_v10 = vsel %vm574_vm4, %v1765_v8, 0.0  ;;  %v1767_v12 = vpop.eup %1766 }
 0x480   : > { %1616 = vmatpush3.bf16.msra.mxu1 %v1615_v9  ;;  %755 = vadd.xlane.f32.xlu0 %v754_v10  ;;  %v932_v25 = vsel %vm574_vm4, %v1767_v12, 0.0 }
 0x481   : > { %1554 = vmatprep.mubr.msk.f32.mxu1 %vm2010_vm0, %v2011_v1  ;;  %1617 = vmatprep.subr.bf16.mxu1 %v2009_v0 }
 0x483   : > { %1555 = vmatmul.mubr.msk.f32.vlgmr.msra.gmra.mrb[8].mxu1 %vm574_vm4, %v1767_v12 }
 0x484   : > { %1561 = vmatprep.mubr.msk.f32.mxu1 %vm2010_vm0, %v2011_v1 }
 0x489   : > { %1620 = vmatpush3.bf16.xpose.msk.msra.mxu1 %vm2343_vm3, %v1618_v15 }
 0x490   : > { %1562 = vmatmul.mubr.msk.f32.vlgmr.msra.gmra.mrb[10].mxu1 %vm494_vm2, %v1023_v16 }
 0x50d   : > { %v756_v37 = vpop.xlane.xlu0 %755 }
 0x552   : > { %v832_v17 = vpop.f32.mrb[6].mxu1 }
 0x553   : > { %v1542_v18 = vpop.f32.mrb[7].mxu1 }
 0x556   : > { %v1010_v20 = vpop.f32.mrb[8].mxu1 }
 0x557   : > { %v1556_v21 = vpop.f32.mrb[9].mxu1 }
 0x563   : > { %v1100_v22 = vpop.f32.mrb[10].mxu1 }
 0x564   : > { %v1563_v23 = vpop.f32.mrb[11].mxu1  ;;  %v1104_v24 = vsel %vm574_vm4, %v1100_v22, -inf }
 0x565   : > { %1105 = vmax.xlane.f32.xlu1 %v1104_v24 }
 0x569   : > { %933 = vadd.xlane.f32.xlu1 %v932_v25 }
 0x56d   : > { %582 = vadd.xlane.f32.xlu1 %v581_v26 }
 0x5f2   : > { %v1106_v19 = vpop.xlane.xlu1 %1105 }
 0x5f3   : > { %v1107_v27 = vsub.f32 %v1100_v22, %v1106_v19 }
 0x5f5   : > { %v1108_v28 = vmul.f32 1.442695, %v1107_v27 }
 0x5f6   : > { %v934_v29 = vpop.xlane.xlu1 %933 }
 0x5f7   : > { %1768 = vpow2.f32 %v1108_v28 }
 0x5f8   : > { %1770 = vrcp.f32 %v934_v29 }
 0x5fa   : > { %v583_v30 = vpop.xlane.xlu1 %582 }
 0x5fb   : > { %1772 = vrcp.f32 %v583_v30 }
 0x5fc   : > { %1774 = vrcp.f32 %v756_v37 }
 0x601   : > { %v1769_v31 = vpop.eup %1768 }
 0x602   : > { %v1771_v32 = vpop.eup %1770  ;;  %1569 = vmatmul.mubr.msk.f32.vlgmr.msra.gmra.mrb[6].mxu0 %vm574_vm4, %v1769_v31  ;;  %v1110_v33 = vsel %vm574_vm4, %v1769_v31, 0.0 }
 0x603   : > { %1111 = vadd.xlane.f32.xlu0 %v1110_v33  ;;  %v1015_v34 = vmul.f32 %v1771_v32, %v1010_v20  ;;  %1579 = vmatprep.mubr.msk.f32.mxu0 %vm2010_vm0, %v2011_v1  ;;  %v332_v1 = vld [vmem:[#allocation11] sm:$0xff] }
 0x604   : > { %v1625_v44 = vpack.c.bf16 %v333_v43, %v332_v1 }
 0x605   : > { %v1773_v35 = vpop.eup %1772  ;;  %1017 = vrot.lane.b32.xlu1 %v1015_v34, %s2019_s0 }
 0x606   : > { %v664_v36 = vmul.f32 %v1773_v35, %v2389_v59  ;;  %v1775_v38 = vpop.eup %1774  ;;  %1626 = vmatpush3.bf16.msra.mxu0 %v1625_v44 }
 0x607   : > { %v837_v39 = vmul.f32 %v1775_v38, %v832_v17  ;;  %1627 = vmatprep.subr.bf16.mxu0 %v2009_v0 }
 0x608   : > { %665 = vst.msk [vmem:[#allocation2] sm:$0xff] %vm494_vm2, %v664_v36 }
 0x60a   : > { %1629 = vmatpush3.bf16.msra.mxu0 %v1628_v47 }
 0x619   : > { %839 = vrot.lane.b32.xlu0 %v837_v39, %s2020_s10 }
 0x677   : > { %v1018_v42 = vpop.permute.xlu1 %1017 }
 0x690   : > { %v1112_v40 = vpop.xlane.xlu0 %1111 }
 0x691   : > { %1776 = vrcp.f32 %v1112_v40 }
 0x694   : > { %v840_v41 = vpop.permute.xlu0 %839 }
 0x695   : > { %843 = vst.msk [vmem:[#allocation2] sm:$0xff] %vm842_vm5, %v840_v41 }
 0x696   : > { %1021 = vst.msk [vmem:[#allocation2] sm:$0xff] %vm1020_vm6, %v1018_v42 }
 0x69b   : > { %v1777_v48 = vpop.eup %1776 }
 0x6d5   : > { %v1188_v49 = vpop.f32.mrb[6].mxu0 }
 0x6d6   : > { %v1193_v50 = vmul.f32 %v1777_v48, %v1188_v49  ;;  %v1570_v51 = vpop.f32.mrb[7].mxu0 }
 0x6d8   : > { %1195 = vrot.lane.b32.xlu1 %v1193_v50, %s2021_s16 }
 0x74a   : > { %v1196_v52 = vpop.permute.xlu1 %1195 }
 0x74b   : > { %1199 = vst.msk [vmem:[#allocation2] sm:$0xff] %vm1198_vm7, %v1196_v52 }
 0x752   : > { %v1200_v53 = vld [vmem:[#allocation2] sm:$0xff] }
 0x753   : > { %1580 = vmatmul.mubr.msk.f32.vlgmr.msra.gmra.mrb[8].mxu0 %vm339_vm1, %v1200_v53 }
 0x826   : > { %v1270_v0 = vpop.f32.mrb[8].mxu0 }
 0x827   : > { %1274 = vst.msk [vmem:[%s322_s26] sm:$0xff] %vm339_vm1, %v1270_v0  ;;  %v1581_v54 = vpop.f32.mrb[9].mxu0 }
 0x828   : > { %1935 = shalt.err (!%p1932_p3)
}
 0x829   : > { %s1936_s9 = scalar_lea.hbm %s2423_s24, 128  ;;  %s1940_s23 = scalar_lea.hbm %s2473_s5, 256 }
 0x82a   : > { %p1937_p9 = scmp.ne.s32.totalorder %s2423_s24, %s1936_s9  ;;  %p1941_p7 = scmp.lt.u32.totalorder %s2423_s24, %s2473_s5 }
 0x82b   : > { %p1942_p12 = scmp.lt.u32.totalorder %s1940_s23, %s1936_s9  ;;  %p1944_p2 = scmp.lt.u32.totalorder %s1936_s9, %s2423_s24 }
 0x82c   : > { %p1938_p13 = pnand %p1937_p9, %p2207_p5 }
 0x82d   : > { %p1943_p1 = por %p1942_p12, %p1941_p7 }
 0x82e   : > { %p1939_p11 = pneg %p1938_p13 }
 0x82f   : > { %p1945_p4 = por %p1944_p2, %p1943_p1 }
 0x831   : > { %p1946_p0 = pnand %p1945_p4, %p1939_p11 }
 0x833   : > { %1949 = shalt.err (!%p1946_p0)
}
 0x834   : > { %1646 = dma.vmem_to_hbm [thread:$0]  (%p2207_p5), %s2425_s27, 128, %s2423_s24, %s1276_s28  }
 0x835 PF: > { %s1301_s16 = sand.u32 1, %s1988_s18   ;;  %p2499_p8 = scmp.ne.s32.totalorder %s2481_s25, 0 }
 0x836   : > { %p2500_p6 = scmp.ge.s32.totalorder %s2000_s21, 2  ;;  %s1302_s6 = scalar_lea.sflag [#allocation5], %s1301_s16 }
 0x838   : > { %p1666_p10 = pnand %p2500_p6, %p2499_p8 }
 0x83a   : > { %1983 = dma.done.wait (!%p1666_p10), %s1302_s6, 128  }
 0x83b   : > { %1985 = vsyncadd (!%p1666_p10), %s1302_s6, 4294967168  ;;  %p22_p3 = scmp.ge.s32.totalorder %s2193_s14, 4   ;;  %s2501_s18 = smov %s1992_s19 }
 0x83c   : > { %s2502_s19 = smov %s1996_s20  ;;  %s2503_s20 = smov %s2203_s30 }
 0x83d   : > { %s2504_s21 = smov %s2193_s14  ;;  %24 = sbr.rel (!%p22_p3) target bundleno = 10 (0xa), region = 110 }
 0x844   :  { %1307 = vsyncpa [#allocation4], 1 }
 0x845   :  { %1309 = vsyncpa [#allocation4 + $0x1], 1 }
 0x846   :  { %1310 = vsyncpa [#allocation7], 1 }
 0x847   :  { %1312 = vsyncpa [#allocation7 + $0x1], 1 }
 0x848   :  { %1313 = vsyncpa [#allocation10], 1 }
 0x849   :  { %1314 = vsyncpa [#allocation5], 1 }
 0x84a   :  { %1316 = vsyncpa [#allocation5 + $0x1], 1 }

</bundles_post_ra>
